<compile_context>
chip_gen: v7x
topology: tpu7x:2x2x1
jax: 0.10.0
libtpu: 0.0.40
codegen_flags: <defaults>
</compile_context>

<pallas_src>
import functools

import jax
import jax.numpy as jnp
from jax.experimental import pallas as pl
from jax.experimental.pallas import tpu as pltpu

EPS = 1e-5  # PyTorch default eps for BatchNorm2d / InstanceNorm2d


def _bn_fold(gamma, beta, mean, var):
    scale = gamma * jax.lax.rsqrt(var + EPS)
    shift = beta - mean * scale
    return scale, shift


def _fold_weights(params):
    """Fold BN running stats (inference, affine) into the conv weights; f32 out."""
    half = params['half']
    P = params['w1'].shape[1]

    bn1_s, bn1_b = _bn_fold(params['bn1_gamma'], params['bn1_beta'],
                            params['bn1_mean'], params['bn1_var'])
    bn2_s, bn2_b = _bn_fold(params['bn2_gamma'], params['bn2_beta'],
                            params['bn2_mean'], params['bn2_var'])
    bn3_s, bn3_b = _bn_fold(params['bn3_gamma'], params['bn3_beta'],
                            params['bn3_mean'], params['bn3_var'])
    bnd_s, bnd_b = _bn_fold(params['bnd_gamma'], params['bnd_beta'],
                            params['bnd_mean'], params['bnd_var'])

    w1_f = params['w1'].at[:, half:].multiply(bn1_s)                    # (Cin, P)
    w2_f = (params['w2'] * bn2_s).reshape(9 * P, P)                     # (9P, P)
    wcat = jnp.concatenate([params['w3'] * bn3_s,
                            params['wd'] * bnd_s], axis=0)              # (P+Cin, Cout)
    bcat = bn3_b + bnd_b                                                # (Cout,)
    return w1_f, w2_f, wcat, bn1_b, bn2_b, bcat


# ----------------------------- fused kernel -----------------------------
def _bottleneck_kernel(x_ref, w1_ref, ing_ref, inb_ref, bn1b_ref,
                       w2_ref, bn2b_ref, wcat_ref, bcat_ref, o_ref,
                       *, H, W, half):
    """One batch sample per grid step. bf16 MXU operands, f32 accumulation."""
    HW = H * W
    P = w1_ref.shape[1]
    bf16 = jnp.bfloat16

    x = x_ref[...]                                                    # (HW, Cin) bf16

    # ---- conv1 (1x1) ----
    y = jnp.dot(x, w1_ref[...], preferred_element_type=jnp.float32)   # (HW, P) f32

    # ---- IBN('a'): InstanceNorm(affine) on first `half` channels, BN on the rest.
    # Single pass over y_in: f32 sum & sum-of-squares (stats kept exact in f32;
    # for very wide stages they could also be one f32 MXU dot with a ones row).
    y_in = y[:, :half]
    inv_hw = 1.0 / HW
    mu = jnp.sum(y_in, axis=0, keepdims=True) * inv_hw
    var = jnp.maximum(jnp.sum(y_in * y_in, axis=0, keepdims=True) * inv_hw - mu * mu, 0.0)
    y_in = (y_in - mu) * jax.lax.rsqrt(var + EPS)
    y_in = y_in * ing_ref[...] + inb_ref[...]
    y_bn = y[:, half:] + bn1b_ref[...]             # bn1 scale pre-folded into w1 cols
    # bf16 immediately: conv2 rounds its operands to bf16 anyway; this halves the
    # halo / im2col temporaries and their vector load/store traffic.
    h1 = jnp.maximum(jnp.concatenate([y_in, y_bn], axis=-1), 0.0).astype(bf16)

    # ---- conv2 (3x3, pad=1, stride=1): bf16 zero halo + im2col, one K=9P dot ----
    h1s = h1.reshape(H, W, P)
    zr = jnp.zeros((1, W, P), bf16)
    h1p = jnp.concatenate([zr, h1s, zr], axis=0)                 # (H+2, W,   P)
    zc = jnp.zeros((H + 2, 1, P), bf16)
    h1p = jnp.concatenate([zc, h1p, zc], axis=1)                 # (H+2, W+2, P)
    patches = jnp.concatenate(
        [h1p[di:di + H, dj:dj + W, :] for di in range(3) for dj in range(3)],
        axis=-1).reshape(HW, 9 * P)                              # (HW, 9P) bf16
    y2 = jnp.dot(patches, w2_ref[...], preferred_element_type=jnp.float32)
    h2 = jnp.maximum(y2 + bn2b_ref[...], 0.0)                    # bn2 scale folded in w2

    # ---- conv3(1x1)+bn3 and downsample(1x1)+bnd merged into one K=(P+Cin) dot ----
    cat = jnp.concatenate([h2.astype(bf16), x], axis=-1)         # (HW, P+Cin) bf16
    y3 = jnp.dot(cat, wcat_ref[...], preferred_element_type=jnp.float32)
    out = jnp.maximum(y3 + bcat_ref[...], 0.0)

    # Lane-dense (HW, Cout) bf16 store; no in-kernel transpose.
    o_ref[...] = out.astype(o_ref.dtype)


def _vmem_limit_bytes(H, W, Cin, P, Cout, weight_bytes):
    """Per-grid-step VMEM need (double-buffered I/O blocks + weights + in-body
    temporaries) with headroom, clamped to sane bounds."""
    HW = H * W
    bf, f4 = 2, 4
    io = 2 * HW * Cin * bf + 2 * HW * Cout * bf        # x / out blocks, double-buffered
    temps = (HW * P * f4                               # conv1 accumulator
             + HW * P * bf                             # h1 (bf16)
             + (H + 2) * (W + 2) * P * bf              # zero-halo copy
             + 9 * HW * P * bf                         # im2col patch slab
             + HW * P * f4                             # conv2 accumulator / h2
             + HW * (P + Cin) * bf                     # cat
             + HW * Cout * f4)                         # conv3 accumulator
    est = io + 2 * weight_bytes + temps
    return int(min(128 * 2**20, max(16 * 2**20, 2 * est)))


# ------------------------------- wrappers --------------------------------
def bottleneck_ibn_forward_nhwc(x_nhwc, params):
    """NHWC in -> NHWC out (bf16). Layout-native entry point: no transpose pass,
    so chained blocks stay NHWC / bf16 end to end."""
    N, H, W, Cin = x_nhwc.shape
    HW = H * W
    P = params['w1'].shape[1]
    Cout = params['w3'].shape[1]
    half = params['half']
    if not (0 < half < P):
        raise ValueError("this kernel implements ibn='a' with 0 < half < planes")

    w1_f, w2_f, wcat_f, bn1_b, bn2_b, bcat = _fold_weights(params)

    x_in = x_nhwc.reshape(N, HW, Cin)                 # free reshape
    if x_in.dtype != jnp.bfloat16:
        x_in = x_in.astype(jnp.bfloat16)              # no-op when producer emits bf16

    args = (x_in,
            w1_f.astype(jnp.bfloat16),                                   # (Cin, P)
            params['in_gamma'].reshape(1, half).astype(jnp.float32),
            params['in_beta'].reshape(1, half).astype(jnp.float32),
            bn1_b.reshape(1, P - half).astype(jnp.float32),
            w2_f.astype(jnp.bfloat16),                                   # (9P, P)
            bn2_b.reshape(1, P).astype(jnp.float32),
            wcat_f.astype(jnp.bfloat16),                                 # (P+Cin, Cout)
            bcat.reshape(1, Cout).astype(jnp.float32))

    kernel = functools.partial(_bottleneck_kernel, H=H, W=W, half=half)
    weight_bytes = sum(int(a.size) * a.dtype.itemsize for a in args[1:])
    vmem_limit = _vmem_limit_bytes(H, W, Cin, P, Cout, weight_bytes)

    def build(weight_pipeline_mode):
        wkw = ({} if weight_pipeline_mode is None
               else {"pipeline_mode": weight_pipeline_mode})
        const2 = lambda n: (0, 0)                 # resident weight / shift blocks
        return pl.pallas_call(
            kernel,
            out_shape=jax.ShapeDtypeStruct((N, HW, Cout), jnp.bfloat16),
            grid=(N,),                            # one sample per grid step
            in_specs=[
                pl.BlockSpec((None, HW, Cin), lambda n: (n, 0, 0)),   # x (per sample)
                pl.BlockSpec((Cin, P), const2, **wkw),                # w1 (bn1 folded)
                pl.BlockSpec((1, half), const2, **wkw),               # IN gamma
                pl.BlockSpec((1, half), const2, **wkw),               # IN beta
                pl.BlockSpec((1, P - half), const2, **wkw),           # bn1 shift
                pl.BlockSpec((9 * P, P), const2, **wkw),              # w2 (im2col)
                pl.BlockSpec((1, P), const2, **wkw),                  # bn2 shift
                pl.BlockSpec((P + Cin, Cout), const2, **wkw),         # [w3*s3 ; wd*sd]
                pl.BlockSpec((1, Cout), const2, **wkw),               # b3 + bd
            ],
            out_specs=pl.BlockSpec((None, HW, Cout), lambda n: (n, 0, 0)),
            compiler_params=pltpu.CompilerParams(
                dimension_semantics=("parallel",),     # shard batch across v7x's 2 TCs
                vmem_limit_bytes=vmem_limit),
        )

    try:
        # Constant-index-map blocks never change across grid steps -> single-buffer
        # them (saves the ~10 MB duplicate wcat at conv5_x scale on v7x's 64 MiB).
        out = build(pl.Buffered(1))(*args)
    except Exception:
        # jax build without BlockSpec pipeline_mode / Buffered(1) support.
        out = build(None)(*args)

    return out.reshape(N, H, W, Cout)          # (N, HW, Cout) -> NHWC, free reshape


def bottleneck_ibn_forward(x_nchw, params):
    """NCHW compatibility shim (matches the PyTorch module's layout). The
    transposes here are an extra HBM pass; chained blocks should call
    `bottleneck_ibn_forward_nhwc` directly and stay NHWC / bf16."""
    x_nhwc = jnp.transpose(x_nchw, (0, 2, 3, 1)).astype(jnp.bfloat16)
    out_nhwc = bottleneck_ibn_forward_nhwc(x_nhwc, params)
    return jnp.transpose(out_nhwc, (0, 3, 1, 2))


# ----------------- references (for correctness checking) -----------------
def _matched_reference(x_nchw, params):
    """Same math as the Pallas kernel in plain JAX: bf16 matmul operands, f32
    accumulation, folded BN scales, single-pass IN stats. Tight kernel check."""
    hp = jax.lax.Precision.HIGHEST
    N, Cin, H, W = x_nchw.shape
    HW = H * W
    P = params['w1'].shape[1]
    Cout = params['w3'].shape[1]
    half = params['half']
    bf = lambda a: a.astype(jnp.bfloat16).astype(jnp.float32)

    w1_f, w2_f, wcat, bn1_b, bn2_b, bcat = _fold_weights(params)
    w1_f, w2_f, wcat = bf(w1_f), bf(w2_f), bf(wcat)

    x_in = bf(jnp.transpose(x_nchw, (0, 2, 3, 1)).reshape(N, HW, Cin))

    y = jnp.einsum('nsc,cp->nsp', x_in, w1_f, precision=hp)
    y_in = y[..., :half]
    mu = jnp.mean(y_in, axis=1, keepdims=True)
    var = jnp.maximum(jnp.mean(y_in * y_in, axis=1, keepdims=True) - mu * mu, 0.0)
    y_in = (y_in - mu) * jax.lax.rsqrt(var + EPS)
    y_in = y_in * params['in_gamma'] + params['in_beta']
    y_bn = y[..., half:] + bn1_b
    h1 = bf(jnp.maximum(jnp.concatenate([y_in, y_bn], axis=-1), 0.0))

    h1p = jnp.pad(h1.reshape(N, H, W, P), ((0, 0), (1, 1), (1, 1), (0, 0)))
    patches = jnp.concatenate(
        [h1p[:, di:di + H, dj:dj + W, :] for di in range(3) for dj in range(3)],
        axis=-1).reshape(N, HW, 9 * P)
    y2 = jnp.einsum('nsk,kp->nsp', patches, w2_f, precision=hp)
    h2 = jnp.maximum(y2 + bn2_b, 0.0)

    cat = jnp.concatenate([bf(h2), x_in], axis=-1)
    y3 = jnp.einsum('nsk,kc->nsc', cat, wcat, precision=hp)
    out = jnp.maximum(y3 + bcat, 0.0)                           # (N, HW, Cout) f32
    return jnp.transpose(out.reshape(N, H, W, Cout), (0, 3, 1, 2))


def _exact_reference(x_nchw, params):
    """Spec-faithful f32 implementation of the PyTorch module (inference)."""
    hp = jax.lax.Precision.HIGHEST
    x = jnp.transpose(x_nchw, (0, 2, 3, 1)).astype(jnp.float32)
    half = params['half']
    y = jnp.einsum('nhwc,cp->nhwp', x, params['w1'], precision=hp)
    y_in = y[..., :half]
    mu = jnp.mean(y_in, axis=(1, 2), keepdims=True)
    var = jnp.mean((y_in - mu) ** 2, axis=(1, 2), keepdims=True)
    y_in = (y_in - mu) / jnp.sqrt(var + EPS) * params['in_gamma'] + params['in_beta']
    y_bn = ((y[..., half:] - params['bn1_mean'])
            / jnp.sqrt(params['bn1_var'] + EPS) * params['bn1_gamma'] + params['bn1_beta'])
    h1 = jax.nn.relu(jnp.concatenate([y_in, y_bn], axis=-1))

    N, H, W, P = h1.shape
    h1p = jnp.pad(h1, ((0, 0), (1, 1), (1, 1), (0, 0)))
    acc = jnp.zeros_like(h1)
    for di in range(3):
        for dj in range(3):
            acc = acc + jnp.einsum('nhwc,cp->nhwp', h1p[:, di:di + H, dj:dj + W, :],
                                   params['w2'][di, dj], precision=hp)
    h2 = jax.nn.relu((acc - params['bn2_mean'])
                     / jnp.sqrt(params['bn2_var'] + EPS) * params['bn2_gamma'] + params['bn2_beta'])

    y3 = jnp.einsum('nhwc,cp->nhwp', h2, params['w3'], precision=hp)
    y3 = (y3 - params['bn3_mean']) / jnp.sqrt(params['bn3_var'] + EPS) * params['bn3_gamma'] + params['bn3_beta']
    r = jnp.einsum('nhwc,cp->nhwp', x, params['wd'], precision=hp)
    r = (r - params['bnd_mean']) / jnp.sqrt(params['bnd_var'] + EPS) * params['bnd_gamma'] + params['bnd_beta']
    out = jax.nn.relu(y3 + r)
    return jnp.transpose(out, (0, 3, 1, 2))


if __name__ == "__main__":
    key = jax.random.PRNGKey(0)
    N, Cin, H, W = 2, 16, 8, 8
    planes, expansion = 8, 4
    Cout = planes * expansion
    half = planes // 2          # IBN ratio 0.5

    ks = jax.random.split(key, 32)

    def nrm(k, shape, scale=0.1):
        return jax.random.normal(k, shape, jnp.float32) * scale

    def uni(k, shape):
        return jax.random.uniform(k, shape, jnp.float32, 0.5, 1.5)

    params = {
        'half': half,
        # conv1: 1x1, Cin -> planes
        'w1': nrm(ks[0], (Cin, planes), 0.3),
        'in_gamma': uni(ks[1], (half,)), 'in_beta': nrm(ks[2], (half,)),
        'bn1_gamma': uni(ks[3], (planes - half,)), 'bn1_beta': nrm(ks[4], (planes - half,)),
        'bn1_mean': nrm(ks[5], (planes - half,)), 'bn1_var': uni(ks[6], (planes - half,)),
        # conv2: 3x3, planes -> planes  (kh, kw, Cin, Cout layout)
        'w2': nrm(ks[7], (3, 3, planes, planes), 0.2),
        'bn2_gamma': uni(ks[8], (planes,)), 'bn2_beta': nrm(ks[9], (planes,)),
        'bn2_mean': nrm(ks[10], (planes,)), 'bn2_var': uni(ks[11], (planes,)),
        # conv3: 1x1, planes -> planes*4
        'w3': nrm(ks[12], (planes, Cout), 0.3),
        'bn3_gamma': uni(ks[13], (Cout,)), 'bn3_beta': nrm(ks[14], (Cout,)),
        'bn3_mean': nrm(ks[15], (Cout,)), 'bn3_var': uni(ks[16], (Cout,)),
        # downsample: 1x1 conv (Cin -> Cout) + BN
        'wd': nrm(ks[17], (Cin, Cout), 0.3),
        'bnd_gamma': uni(ks[18], (Cout,)), 'bnd_beta': nrm(ks[19], (Cout,)),
        'bnd_mean': nrm(ks[20], (Cout,)), 'bnd_var': uni(ks[21], (Cout,)),
    }

    x = jax.random.normal(ks[31], (N, Cin, H, W), jnp.float32)

    out = jax.block_until_ready(bottleneck_ibn_forward(x, params))
    assert out.shape == (N, Cout, H, W)
    assert out.dtype == jnp.bfloat16
    out_f32 = out.astype(jnp.float32)

    # Tight check: reference replicates the kernel's bf16-operand math; relative
    # metric absorbs the bf16 output rounding (one ulp) exactly where it occurs.
    ref_m = _matched_reference(x, params)
    rel_tight = float(jnp.max(jnp.abs(out_f32 - ref_m) / (1.0 + jnp.abs(ref_m))))
    if rel_tight > 2e-2:
        raise SystemExit(f"Mismatch vs matched (bf16-operand) reference: {rel_tight}")

    # Coarse sanity check vs exact f32 module math (deviations: bf16 MXU operands
    # and bf16 output).
    err_f32 = float(jnp.max(jnp.abs(out_f32 - _exact_reference(x, params))))
    if err_f32 > 0.5:
        raise SystemExit(f"Mismatch vs exact f32 reference: {err_f32}")

    print("KERNEL_OK")
</pallas_src>

<mosaic_0001>
module attributes {stable_mosaic.version = 11 : i64} {
  func.func @_bottleneck_kernel(%arg0: i32, %arg1: memref<1x64x16xbf16, #tpu.memory_space<vmem>>, %arg2: memref<16x8xbf16, #tpu.memory_space<vmem>>, %arg3: memref<1x4xf32, #tpu.memory_space<vmem>>, %arg4: memref<1x4xf32, #tpu.memory_space<vmem>>, %arg5: memref<1x4xf32, #tpu.memory_space<vmem>>, %arg6: memref<72x8xbf16, #tpu.memory_space<vmem>>, %arg7: memref<1x8xf32, #tpu.memory_space<vmem>>, %arg8: memref<24x32xbf16, #tpu.memory_space<vmem>>, %arg9: memref<1x32xf32, #tpu.memory_space<vmem>>, %arg10: memref<1x64x32xbf16, #tpu.memory_space<vmem>>) attributes {dimension_semantics = [#tpu.dimension_semantics<parallel>], iteration_bounds = array<i64: 2>, scalar_prefetch = 0 : i64, scratch_operands = 0 : i64, tpu.core_type = #tpu.core_type<tc>, window_params = [{transform_indices = @transform_0, window_bounds = array<i64: 1, 64, 16>}, {pipeline_mode = #tpu.pipeline_mode<synchronous>, transform_indices = @transform_1, window_bounds = array<i64: 16, 8>}, {pipeline_mode = #tpu.pipeline_mode<synchronous>, transform_indices = @transform_2, window_bounds = array<i64: 1, 4>}, {pipeline_mode = #tpu.pipeline_mode<synchronous>, transform_indices = @transform_3, window_bounds = array<i64: 1, 4>}, {pipeline_mode = #tpu.pipeline_mode<synchronous>, transform_indices = @transform_4, window_bounds = array<i64: 1, 4>}, {pipeline_mode = #tpu.pipeline_mode<synchronous>, transform_indices = @transform_5, window_bounds = array<i64: 72, 8>}, {pipeline_mode = #tpu.pipeline_mode<synchronous>, transform_indices = @transform_6, window_bounds = array<i64: 1, 8>}, {pipeline_mode = #tpu.pipeline_mode<synchronous>, transform_indices = @transform_7, window_bounds = array<i64: 24, 32>}, {pipeline_mode = #tpu.pipeline_mode<synchronous>, transform_indices = @transform_8, window_bounds = array<i64: 1, 32>}, {transform_indices = @transform_9, window_bounds = array<i64: 1, 64, 32>}]} {
    %c0 = arith.constant 0 : index
    %c0_0 = arith.constant 0 : index
    %c0_1 = arith.constant 0 : index
    %0 = vector.load %arg1[%c0, %c0_0, %c0_1] : memref<1x64x16xbf16, #tpu.memory_space<vmem>>, vector<1x64x16xbf16>
    %1 = vector.shape_cast %0 : vector<1x64x16xbf16> to vector<64x16xbf16>
    %c0_2 = arith.constant 0 : index
    %c0_3 = arith.constant 0 : index
    %2 = vector.load %arg2[%c0_2, %c0_3] : memref<16x8xbf16, #tpu.memory_space<vmem>>, vector<16x8xbf16>
    %cst = arith.constant dense<0.000000e+00> : vector<64x8xf32>
    %3 = tpu.matmul %1, %2, %cst {dimension_numbers = #tpu.dot_dimension_numbers<[1], [0], [0], [1], [0, 0, 1, 1], [], []>} : vector<64x16xbf16>, vector<16x8xbf16>, vector<64x8xf32> -> vector<64x8xf32>
    %4 = vector.extract_strided_slice %3 {offsets = [0, 0], sizes = [64, 4], strides = [1, 1]} : vector<64x8xf32> to vector<64x4xf32>
    %cst_4 = arith.constant dense<0.000000e+00> : vector<4xf32>
    %5 = vector.multi_reduction <add>, %4, %cst_4 [0] : vector<64x4xf32> to vector<4xf32>
    %6 = vector.shape_cast %5 : vector<4xf32> to vector<1x4xf32>
    %cst_5 = arith.constant 1.562500e-02 : f32
    %7 = vector.broadcast %cst_5 : f32 to vector<1x4xf32>
    %8 = arith.mulf %6, %7 : vector<1x4xf32>
    %9 = arith.mulf %4, %4 : vector<64x4xf32>
    %cst_6 = arith.constant dense<0.000000e+00> : vector<4xf32>
    %10 = vector.multi_reduction <add>, %9, %cst_6 [0] : vector<64x4xf32> to vector<4xf32>
    %11 = vector.shape_cast %10 : vector<4xf32> to vector<1x4xf32>
    %cst_7 = arith.constant 1.562500e-02 : f32
    %12 = vector.broadcast %cst_7 : f32 to vector<1x4xf32>
    %13 = arith.mulf %11, %12 : vector<1x4xf32>
    %14 = arith.mulf %8, %8 : vector<1x4xf32>
    %15 = arith.subf %13, %14 : vector<1x4xf32>
    %cst_8 = arith.constant 0.000000e+00 : f32
    %16 = vector.broadcast %cst_8 : f32 to vector<1x4xf32>
    %17 = arith.maximumf %15, %16 : vector<1x4xf32>
    %18 = vector.broadcast %8 : vector<1x4xf32> to vector<64x4xf32>
    %19 = arith.subf %4, %18 : vector<64x4xf32>
    %cst_9 = arith.constant 9.99999974E-6 : f32
    %20 = vector.broadcast %cst_9 : f32 to vector<1x4xf32>
    %21 = arith.addf %17, %20 : vector<1x4xf32>
    %22 = math.rsqrt %21 : vector<1x4xf32>
    %23 = vector.broadcast %22 : vector<1x4xf32> to vector<64x4xf32>
    %24 = arith.mulf %19, %23 : vector<64x4xf32>
    %c0_10 = arith.constant 0 : index
    %c0_11 = arith.constant 0 : index
    %25 = vector.load %arg3[%c0_10, %c0_11] : memref<1x4xf32, #tpu.memory_space<vmem>>, vector<1x4xf32>
    %26 = vector.broadcast %25 : vector<1x4xf32> to vector<64x4xf32>
    %27 = arith.mulf %24, %26 : vector<64x4xf32>
    %c0_12 = arith.constant 0 : index
    %c0_13 = arith.constant 0 : index
    %28 = vector.load %arg4[%c0_12, %c0_13] : memref<1x4xf32, #tpu.memory_space<vmem>>, vector<1x4xf32>
    %29 = vector.broadcast %28 : vector<1x4xf32> to vector<64x4xf32>
    %30 = arith.addf %27, %29 : vector<64x4xf32>
    %31 = vector.extract_strided_slice %3 {offsets = [0, 4], sizes = [64, 4], strides = [1, 1]} : vector<64x8xf32> to vector<64x4xf32>
    %c0_14 = arith.constant 0 : index
    %c0_15 = arith.constant 0 : index
    %32 = vector.load %arg5[%c0_14, %c0_15] : memref<1x4xf32, #tpu.memory_space<vmem>>, vector<1x4xf32>
    %33 = vector.broadcast %32 : vector<1x4xf32> to vector<64x4xf32>
    %34 = arith.addf %31, %33 : vector<64x4xf32>
    %35 = tpu.concatenate %30, %34 in 1 : vector<64x4xf32>, vector<64x4xf32> -> vector<64x8xf32>
    %cst_16 = arith.constant 0.000000e+00 : f32
    %36 = vector.broadcast %cst_16 : f32 to vector<64x8xf32>
    %37 = arith.maximumf %35, %36 : vector<64x8xf32>
    %38 = arith.truncf %37 : vector<64x8xf32> to vector<64x8xbf16>
    %39 = vector.shape_cast %38 : vector<64x8xbf16> to vector<8x8x8xbf16>
    %cst_17 = arith.constant 0.000000e+00 : bf16
    %40 = vector.broadcast %cst_17 : bf16 to vector<1x8x8xbf16>
    %41 = tpu.concatenate %40, %39, %40 in 0 : vector<1x8x8xbf16>, vector<8x8x8xbf16>, vector<1x8x8xbf16> -> vector<10x8x8xbf16>
    %cst_18 = arith.constant 0.000000e+00 : bf16
    %42 = vector.broadcast %cst_18 : bf16 to vector<10x1x8xbf16>
    %43 = tpu.concatenate %42, %41, %42 in 1 : vector<10x1x8xbf16>, vector<10x8x8xbf16>, vector<10x1x8xbf16> -> vector<10x10x8xbf16>
    %44 = vector.extract_strided_slice %43 {offsets = [0, 0, 0], sizes = [8, 8, 8], strides = [1, 1, 1]} : vector<10x10x8xbf16> to vector<8x8x8xbf16>
    %45 = vector.extract_strided_slice %43 {offsets = [0, 1, 0], sizes = [8, 8, 8], strides = [1, 1, 1]} : vector<10x10x8xbf16> to vector<8x8x8xbf16>
    %46 = vector.extract_strided_slice %43 {offsets = [0, 2, 0], sizes = [8, 8, 8], strides = [1, 1, 1]} : vector<10x10x8xbf16> to vector<8x8x8xbf16>
    %47 = vector.extract_strided_slice %43 {offsets = [1, 0, 0], sizes = [8, 8, 8], strides = [1, 1, 1]} : vector<10x10x8xbf16> to vector<8x8x8xbf16>
    %48 = vector.extract_strided_slice %43 {offsets = [1, 1, 0], sizes = [8, 8, 8], strides = [1, 1, 1]} : vector<10x10x8xbf16> to vector<8x8x8xbf16>
    %49 = vector.extract_strided_slice %43 {offsets = [1, 2, 0], sizes = [8, 8, 8], strides = [1, 1, 1]} : vector<10x10x8xbf16> to vector<8x8x8xbf16>
    %50 = vector.extract_strided_slice %43 {offsets = [2, 0, 0], sizes = [8, 8, 8], strides = [1, 1, 1]} : vector<10x10x8xbf16> to vector<8x8x8xbf16>
    %51 = vector.extract_strided_slice %43 {offsets = [2, 1, 0], sizes = [8, 8, 8], strides = [1, 1, 1]} : vector<10x10x8xbf16> to vector<8x8x8xbf16>
    %52 = vector.extract_strided_slice %43 {offsets = [2, 2, 0], sizes = [8, 8, 8], strides = [1, 1, 1]} : vector<10x10x8xbf16> to vector<8x8x8xbf16>
    %53 = tpu.concatenate %44, %45, %46, %47, %48, %49, %50, %51, %52 in 2 : vector<8x8x8xbf16>, vector<8x8x8xbf16>, vector<8x8x8xbf16>, vector<8x8x8xbf16>, vector<8x8x8xbf16>, vector<8x8x8xbf16>, vector<8x8x8xbf16>, vector<8x8x8xbf16>, vector<8x8x8xbf16> -> vector<8x8x72xbf16>
    %54 = vector.shape_cast %53 : vector<8x8x72xbf16> to vector<64x72xbf16>
    %c0_19 = arith.constant 0 : index
    %c0_20 = arith.constant 0 : index
    %55 = vector.load %arg6[%c0_19, %c0_20] : memref<72x8xbf16, #tpu.memory_space<vmem>>, vector<72x8xbf16>
    %cst_21 = arith.constant dense<0.000000e+00> : vector<64x8xf32>
    %56 = tpu.matmul %54, %55, %cst_21 {dimension_numbers = #tpu.dot_dimension_numbers<[1], [0], [0], [1], [0, 0, 1, 1], [], []>} : vector<64x72xbf16>, vector<72x8xbf16>, vector<64x8xf32> -> vector<64x8xf32>
    %c0_22 = arith.constant 0 : index
    %c0_23 = arith.constant 0 : index
    %57 = vector.load %arg7[%c0_22, %c0_23] : memref<1x8xf32, #tpu.memory_space<vmem>>, vector<1x8xf32>
    %58 = vector.broadcast %57 : vector<1x8xf32> to vector<64x8xf32>
    %59 = arith.addf %56, %58 : vector<64x8xf32>
    %cst_24 = arith.constant 0.000000e+00 : f32
    %60 = vector.broadcast %cst_24 : f32 to vector<64x8xf32>
    %61 = arith.maximumf %59, %60 : vector<64x8xf32>
    %62 = arith.truncf %61 : vector<64x8xf32> to vector<64x8xbf16>
    %63 = tpu.concatenate %62, %1 in 1 : vector<64x8xbf16>, vector<64x16xbf16> -> vector<64x24xbf16>
    %c0_25 = arith.constant 0 : index
    %c0_26 = arith.constant 0 : index
    %64 = vector.load %arg8[%c0_25, %c0_26] : memref<24x32xbf16, #tpu.memory_space<vmem>>, vector<24x32xbf16>
    %cst_27 = arith.constant dense<0.000000e+00> : vector<64x32xf32>
    %65 = tpu.matmul %63, %64, %cst_27 {dimension_numbers = #tpu.dot_dimension_numbers<[1], [0], [0], [1], [0, 0, 1, 1], [], []>} : vector<64x24xbf16>, vector<24x32xbf16>, vector<64x32xf32> -> vector<64x32xf32>
    %c0_28 = arith.constant 0 : index
    %c0_29 = arith.constant 0 : index
    %66 = vector.load %arg9[%c0_28, %c0_29] : memref<1x32xf32, #tpu.memory_space<vmem>>, vector<1x32xf32>
    %67 = vector.broadcast %66 : vector<1x32xf32> to vector<64x32xf32>
    %68 = arith.addf %65, %67 : vector<64x32xf32>
    %cst_30 = arith.constant 0.000000e+00 : f32
    %69 = vector.broadcast %cst_30 : f32 to vector<64x32xf32>
    %70 = arith.maximumf %68, %69 : vector<64x32xf32>
    %71 = arith.truncf %70 : vector<64x32xf32> to vector<64x32xbf16>
    %c0_31 = arith.constant 0 : index
    %c0_32 = arith.constant 0 : index
    %c0_33 = arith.constant 0 : index
    %72 = vector.load %arg10[%c0_31, %c0_32, %c0_33] : memref<1x64x32xbf16, #tpu.memory_space<vmem>>, vector<1x64x32xbf16>
    %73 = vector.shape_cast %72 : vector<1x64x32xbf16> to vector<64x32xbf16>
    %74 = vector.shape_cast %71 : vector<64x32xbf16> to vector<1x64x32xbf16>
    tpu.vector_store %arg10[%c0_31, %c0_32, %c0_33], %74 {strides = array<i32>} : memref<1x64x32xbf16, #tpu.memory_space<vmem>>, vector<1x64x32xbf16>,
    return
  }
  func.func @transform_0(%arg0: i32) -> (i32, i32, i32) {
    %c0_i32 = arith.constant 0 : i32
    %c0_i32_0 = arith.constant 0 : i32
    %c0_i32_1 = arith.constant 0 : i32
    return %arg0, %c0_i32, %c0_i32_0 : i32, i32, i32
  }
  func.func @transform_1(%arg0: i32) -> (i32, i32) {
    %c0_i32 = arith.constant 0 : i32
    %c0_i32_0 = arith.constant 0 : i32
    %c0_i32_1 = arith.constant 0 : i32
    return %c0_i32, %c0_i32_0 : i32, i32
  }
  func.func @transform_2(%arg0: i32) -> (i32, i32) {
    %c0_i32 = arith.constant 0 : i32
    %c0_i32_0 = arith.constant 0 : i32
    %c0_i32_1 = arith.constant 0 : i32
    return %c0_i32, %c0_i32_0 : i32, i32
  }
  func.func @transform_3(%arg0: i32) -> (i32, i32) {
    %c0_i32 = arith.constant 0 : i32
    %c0_i32_0 = arith.constant 0 : i32
    %c0_i32_1 = arith.constant 0 : i32
    return %c0_i32, %c0_i32_0 : i32, i32
  }
  func.func @transform_4(%arg0: i32) -> (i32, i32) {
    %c0_i32 = arith.constant 0 : i32
    %c0_i32_0 = arith.constant 0 : i32
    %c0_i32_1 = arith.constant 0 : i32
    return %c0_i32, %c0_i32_0 : i32, i32
  }
  func.func @transform_5(%arg0: i32) -> (i32, i32) {
    %c0_i32 = arith.constant 0 : i32
    %c0_i32_0 = arith.constant 0 : i32
    %c0_i32_1 = arith.constant 0 : i32
    return %c0_i32, %c0_i32_0 : i32, i32
  }
  func.func @transform_6(%arg0: i32) -> (i32, i32) {
    %c0_i32 = arith.constant 0 : i32
    %c0_i32_0 = arith.constant 0 : i32
    %c0_i32_1 = arith.constant 0 : i32
    return %c0_i32, %c0_i32_0 : i32, i32
  }
  func.func @transform_7(%arg0: i32) -> (i32, i32) {
    %c0_i32 = arith.constant 0 : i32
    %c0_i32_0 = arith.constant 0 : i32
    %c0_i32_1 = arith.constant 0 : i32
    return %c0_i32, %c0_i32_0 : i32, i32
  }
  func.func @transform_8(%arg0: i32) -> (i32, i32) {
    %c0_i32 = arith.constant 0 : i32
    %c0_i32_0 = arith.constant 0 : i32
    %c0_i32_1 = arith.constant 0 : i32
    return %c0_i32, %c0_i32_0 : i32, i32
  }
  func.func @transform_9(%arg0: i32) -> (i32, i32, i32) {
    %c0_i32 = arith.constant 0 : i32
    %c0_i32_0 = arith.constant 0 : i32
    %c0_i32_1 = arith.constant 0 : i32
    return %arg0, %c0_i32, %c0_i32_0 : i32, i32, i32
  }
}

module attributes {stable_mosaic.version = 11 : i64} {
  func.func @_bottleneck_kernel(%arg0: i32, %arg1: memref<1x64x16xbf16, #tpu.memory_space<vmem>>, %arg2: memref<16x8xbf16, #tpu.memory_space<vmem>>, %arg3: memref<1x4xf32, #tpu.memory_space<vmem>>, %arg4: memref<1x4xf32, #tpu.memory_space<vmem>>, %arg5: memref<1x4xf32, #tpu.memory_space<vmem>>, %arg6: memref<72x8xbf16, #tpu.memory_space<vmem>>, %arg7: memref<1x8xf32, #tpu.memory_space<vmem>>, %arg8: memref<24x32xbf16, #tpu.memory_space<vmem>>, %arg9: memref<1x32xf32, #tpu.memory_space<vmem>>, %arg10: memref<1x64x32xbf16, #tpu.memory_space<vmem>>) attributes {dimension_semantics = [#tpu.dimension_semantics<parallel>], iteration_bounds = array<i64: 2>, scalar_prefetch = 0 : i64, scratch_operands = 0 : i64, tpu.core_type = #tpu.core_type<tc>, window_params = [{transform_indices = @transform_0, window_bounds = array<i64: 1, 64, 16>}, {pipeline_mode = #tpu.pipeline_mode<synchronous>, transform_indices = @transform_1, window_bounds = array<i64: 16, 8>}, {pipeline_mode = #tpu.pipeline_mode<synchronous>, transform_indices = @transform_2, window_bounds = array<i64: 1, 4>}, {pipeline_mode = #tpu.pipeline_mode<synchronous>, transform_indices = @transform_3, window_bounds = array<i64: 1, 4>}, {pipeline_mode = #tpu.pipeline_mode<synchronous>, transform_indices = @transform_4, window_bounds = array<i64: 1, 4>}, {pipeline_mode = #tpu.pipeline_mode<synchronous>, transform_indices = @transform_5, window_bounds = array<i64: 72, 8>}, {pipeline_mode = #tpu.pipeline_mode<synchronous>, transform_indices = @transform_6, window_bounds = array<i64: 1, 8>}, {pipeline_mode = #tpu.pipeline_mode<synchronous>, transform_indices = @transform_7, window_bounds = array<i64: 24, 32>}, {pipeline_mode = #tpu.pipeline_mode<synchronous>, transform_indices = @transform_8, window_bounds = array<i64: 1, 32>}, {transform_indices = @transform_9, window_bounds = array<i64: 1, 64, 32>}]} {
    %c0 = arith.constant 0 : index
    %c0_0 = arith.constant 0 : index
    %c0_1 = arith.constant 0 : index
    %0 = vector.load %arg1[%c0, %c0_0, %c0_1] : memref<1x64x16xbf16, #tpu.memory_space<vmem>>, vector<1x64x16xbf16>
    %1 = vector.shape_cast %0 : vector<1x64x16xbf16> to vector<64x16xbf16>
    %c0_2 = arith.constant 0 : index
    %c0_3 = arith.constant 0 : index
    %2 = vector.load %arg2[%c0_2, %c0_3] : memref<16x8xbf16, #tpu.memory_space<vmem>>, vector<16x8xbf16>
    %cst = arith.constant dense<0.000000e+00> : vector<64x8xf32>
    %3 = tpu.matmul %1, %2, %cst {dimension_numbers = #tpu.dot_dimension_numbers<[1], [0], [0], [1], [0, 0, 1, 1], [], []>} : vector<64x16xbf16>, vector<16x8xbf16>, vector<64x8xf32> -> vector<64x8xf32>
    %4 = vector.extract_strided_slice %3 {offsets = [0, 0], sizes = [64, 4], strides = [1, 1]} : vector<64x8xf32> to vector<64x4xf32>
    %cst_4 = arith.constant dense<0.000000e+00> : vector<4xf32>
    %5 = vector.multi_reduction <add>, %4, %cst_4 [0] : vector<64x4xf32> to vector<4xf32>
    %6 = vector.shape_cast %5 : vector<4xf32> to vector<1x4xf32>
    %cst_5 = arith.constant 1.562500e-02 : f32
    %7 = vector.broadcast %cst_5 : f32 to vector<1x4xf32>
    %8 = arith.mulf %6, %7 : vector<1x4xf32>
    %9 = arith.mulf %4, %4 : vector<64x4xf32>
    %cst_6 = arith.constant dense<0.000000e+00> : vector<4xf32>
    %10 = vector.multi_reduction <add>, %9, %cst_6 [0] : vector<64x4xf32> to vector<4xf32>
    %11 = vector.shape_cast %10 : vector<4xf32> to vector<1x4xf32>
    %cst_7 = arith.constant 1.562500e-02 : f32
    %12 = vector.broadcast %cst_7 : f32 to vector<1x4xf32>
    %13 = arith.mulf %11, %12 : vector<1x4xf32>
    %14 = arith.mulf %8, %8 : vector<1x4xf32>
    %15 = arith.subf %13, %14 : vector<1x4xf32>
    %cst_8 = arith.constant 0.000000e+00 : f32
    %16 = vector.broadcast %cst_8 : f32 to vector<1x4xf32>
    %17 = arith.maximumf %15, %16 : vector<1x4xf32>
    %18 = vector.broadcast %8 : vector<1x4xf32> to vector<64x4xf32>
    %19 = arith.subf %4, %18 : vector<64x4xf32>
    %cst_9 = arith.constant 9.99999974E-6 : f32
    %20 = vector.broadcast %cst_9 : f32 to vector<1x4xf32>
    %21 = arith.addf %17, %20 : vector<1x4xf32>
    %22 = math.rsqrt %21 : vector<1x4xf32>
    %23 = vector.broadcast %22 : vector<1x4xf32> to vector<64x4xf32>
    %24 = arith.mulf %19, %23 : vector<64x4xf32>
    %c0_10 = arith.constant 0 : index
    %c0_11 = arith.constant 0 : index
    %25 = vector.load %arg3[%c0_10, %c0_11] : memref<1x4xf32, #tpu.memory_space<vmem>>, vector<1x4xf32>
    %26 = vector.broadcast %25 : vector<1x4xf32> to vector<64x4xf32>
    %27 = arith.mulf %24, %26 : vector<64x4xf32>
    %c0_12 = arith.constant 0 : index
    %c0_13 = arith.constant 0 : index
    %28 = vector.load %arg4[%c0_12, %c0_13] : memref<1x4xf32, #tpu.memory_space<vmem>>, vector<1x4xf32>
    %29 = vector.broadcast %28 : vector<1x4xf32> to vector<64x4xf32>
    %30 = arith.addf %27, %29 : vector<64x4xf32>
    %31 = vector.extract_strided_slice %3 {offsets = [0, 4], sizes = [64, 4], strides = [1, 1]} : vector<64x8xf32> to vector<64x4xf32>
    %c0_14 = arith.constant 0 : index
    %c0_15 = arith.constant 0 : index
    %32 = vector.load %arg5[%c0_14, %c0_15] : memref<1x4xf32, #tpu.memory_space<vmem>>, vector<1x4xf32>
    %33 = vector.broadcast %32 : vector<1x4xf32> to vector<64x4xf32>
    %34 = arith.addf %31, %33 : vector<64x4xf32>
    %35 = tpu.concatenate %30, %34 in 1 : vector<64x4xf32>, vector<64x4xf32> -> vector<64x8xf32>
    %cst_16 = arith.constant 0.000000e+00 : f32
    %36 = vector.broadcast %cst_16 : f32 to vector<64x8xf32>
    %37 = arith.maximumf %35, %36 : vector<64x8xf32>
    %38 = arith.truncf %37 : vector<64x8xf32> to vector<64x8xbf16>
    %39 = vector.shape_cast %38 : vector<64x8xbf16> to vector<8x8x8xbf16>
    %cst_17 = arith.constant 0.000000e+00 : bf16
    %40 = vector.broadcast %cst_17 : bf16 to vector<1x8x8xbf16>
    %41 = tpu.concatenate %40, %39, %40 in 0 : vector<1x8x8xbf16>, vector<8x8x8xbf16>, vector<1x8x8xbf16> -> vector<10x8x8xbf16>
    %cst_18 = arith.constant 0.000000e+00 : bf16
    %42 = vector.broadcast %cst_18 : bf16 to vector<10x1x8xbf16>
    %43 = tpu.concatenate %42, %41, %42 in 1 : vector<10x1x8xbf16>, vector<10x8x8xbf16>, vector<10x1x8xbf16> -> vector<10x10x8xbf16>
    %44 = vector.extract_strided_slice %43 {offsets = [0, 0, 0], sizes = [8, 8, 8], strides = [1, 1, 1]} : vector<10x10x8xbf16> to vector<8x8x8xbf16>
    %45 = vector.extract_strided_slice %43 {offsets = [0, 1, 0], sizes = [8, 8, 8], strides = [1, 1, 1]} : vector<10x10x8xbf16> to vector<8x8x8xbf16>
    %46 = vector.extract_strided_slice %43 {offsets = [0, 2, 0], sizes = [8, 8, 8], strides = [1, 1, 1]} : vector<10x10x8xbf16> to vector<8x8x8xbf16>
    %47 = vector.extract_strided_slice %43 {offsets = [1, 0, 0], sizes = [8, 8, 8], strides = [1, 1, 1]} : vector<10x10x8xbf16> to vector<8x8x8xbf16>
    %48 = vector.extract_strided_slice %43 {offsets = [1, 1, 0], sizes = [8, 8, 8], strides = [1, 1, 1]} : vector<10x10x8xbf16> to vector<8x8x8xbf16>
    %49 = vector.extract_strided_slice %43 {offsets = [1, 2, 0], sizes = [8, 8, 8], strides = [1, 1, 1]} : vector<10x10x8xbf16> to vector<8x8x8xbf16>
    %50 = vector.extract_strided_slice %43 {offsets = [2, 0, 0], sizes = [8, 8, 8], strides = [1, 1, 1]} : vector<10x10x8xbf16> to vector<8x8x8xbf16>
    %51 = vector.extract_strided_slice %43 {offsets = [2, 1, 0], sizes = [8, 8, 8], strides = [1, 1, 1]} : vector<10x10x8xbf16> to vector<8x8x8xbf16>
    %52 = vector.extract_strided_slice %43 {offsets = [2, 2, 0], sizes = [8, 8, 8], strides = [1, 1, 1]} : vector<10x10x8xbf16> to vector<8x8x8xbf16>
    %53 = tpu.concatenate %44, %45, %46, %47, %48, %49, %50, %51, %52 in 2 : vector<8x8x8xbf16>, vector<8x8x8xbf16>, vector<8x8x8xbf16>, vector<8x8x8xbf16>, vector<8x8x8xbf16>, vector<8x8x8xbf16>, vector<8x8x8xbf16>, vector<8x8x8xbf16>, vector<8x8x8xbf16> -> vector<8x8x72xbf16>
    %54 = vector.shape_cast %53 : vector<8x8x72xbf16> to vector<64x72xbf16>
    %c0_19 = arith.constant 0 : index
    %c0_20 = arith.constant 0 : index
    %55 = vector.load %arg6[%c0_19, %c0_20] : memref<72x8xbf16, #tpu.memory_space<vmem>>, vector<72x8xbf16>
    %cst_21 = arith.constant dense<0.000000e+00> : vector<64x8xf32>
    %56 = tpu.matmul %54, %55, %cst_21 {dimension_numbers = #tpu.dot_dimension_numbers<[1], [0], [0], [1], [0, 0, 1, 1], [], []>} : vector<64x72xbf16>, vector<72x8xbf16>, vector<64x8xf32> -> vector<64x8xf32>
    %c0_22 = arith.constant 0 : index
    %c0_23 = arith.constant 0 : index
    %57 = vector.load %arg7[%c0_22, %c0_23] : memref<1x8xf32, #tpu.memory_space<vmem>>, vector<1x8xf32>
    %58 = vector.broadcast %57 : vector<1x8xf32> to vector<64x8xf32>
    %59 = arith.addf %56, %58 : vector<64x8xf32>
    %cst_24 = arith.constant 0.000000e+00 : f32
    %60 = vector.broadcast %cst_24 : f32 to vector<64x8xf32>
    %61 = arith.maximumf %59, %60 : vector<64x8xf32>
    %62 = arith.truncf %61 : vector<64x8xf32> to vector<64x8xbf16>
    %63 = tpu.concatenate %62, %1 in 1 : vector<64x8xbf16>, vector<64x16xbf16> -> vector<64x24xbf16>
    %c0_25 = arith.constant 0 : index
    %c0_26 = arith.constant 0 : index
    %64 = vector.load %arg8[%c0_25, %c0_26] : memref<24x32xbf16, #tpu.memory_space<vmem>>, vector<24x32xbf16>
    %cst_27 = arith.constant dense<0.000000e+00> : vector<64x32xf32>
    %65 = tpu.matmul %63, %64, %cst_27 {dimension_numbers = #tpu.dot_dimension_numbers<[1], [0], [0], [1], [0, 0, 1, 1], [], []>} : vector<64x24xbf16>, vector<24x32xbf16>, vector<64x32xf32> -> vector<64x32xf32>
    %c0_28 = arith.constant 0 : index
    %c0_29 = arith.constant 0 : index
    %66 = vector.load %arg9[%c0_28, %c0_29] : memref<1x32xf32, #tpu.memory_space<vmem>>, vector<1x32xf32>
    %67 = vector.broadcast %66 : vector<1x32xf32> to vector<64x32xf32>
    %68 = arith.addf %65, %67 : vector<64x32xf32>
    %cst_30 = arith.constant 0.000000e+00 : f32
    %69 = vector.broadcast %cst_30 : f32 to vector<64x32xf32>
    %70 = arith.maximumf %68, %69 : vector<64x32xf32>
    %71 = arith.truncf %70 : vector<64x32xf32> to vector<64x32xbf16>
    %c0_31 = arith.constant 0 : index
    %c0_32 = arith.constant 0 : index
    %c0_33 = arith.constant 0 : index
    %72 = vector.load %arg10[%c0_31, %c0_32, %c0_33] : memref<1x64x32xbf16, #tpu.memory_space<vmem>>, vector<1x64x32xbf16>
    %73 = vector.shape_cast %72 : vector<1x64x32xbf16> to vector<64x32xbf16>
    %74 = vector.shape_cast %71 : vector<64x32xbf16> to vector<1x64x32xbf16>
    tpu.vector_store %arg10[%c0_31, %c0_32, %c0_33], %74 {strides = array<i32>} : memref<1x64x32xbf16, #tpu.memory_space<vmem>>, vector<1x64x32xbf16>,
    return
  }
  func.func @transform_0(%arg0: i32) -> (i32, i32, i32) {
    %c0_i32 = arith.constant 0 : i32
    %c0_i32_0 = arith.constant 0 : i32
    %c0_i32_1 = arith.constant 0 : i32
    return %arg0, %c0_i32, %c0_i32_0 : i32, i32, i32
  }
  func.func @transform_1(%arg0: i32) -> (i32, i32) {
    %c0_i32 = arith.constant 0 : i32
    %c0_i32_0 = arith.constant 0 : i32
    %c0_i32_1 = arith.constant 0 : i32
    return %c0_i32, %c0_i32_0 : i32, i32
  }
  func.func @transform_2(%arg0: i32) -> (i32, i32) {
    %c0_i32 = arith.constant 0 : i32
    %c0_i32_0 = arith.constant 0 : i32
    %c0_i32_1 = arith.constant 0 : i32
    return %c0_i32, %c0_i32_0 : i32, i32
  }
  func.func @transform_3(%arg0: i32) -> (i32, i32) {
    %c0_i32 = arith.constant 0 : i32
    %c0_i32_0 = arith.constant 0 : i32
    %c0_i32_1 = arith.constant 0 : i32
    return %c0_i32, %c0_i32_0 : i32, i32
  }
  func.func @transform_4(%arg0: i32) -> (i32, i32) {
    %c0_i32 = arith.constant 0 : i32
    %c0_i32_0 = arith.constant 0 : i32
    %c0_i32_1 = arith.constant 0 : i32
    return %c0_i32, %c0_i32_0 : i32, i32
  }
  func.func @transform_5(%arg0: i32) -> (i32, i32) {
    %c0_i32 = arith.constant 0 : i32
    %c0_i32_0 = arith.constant 0 : i32
    %c0_i32_1 = arith.constant 0 : i32
    return %c0_i32, %c0_i32_0 : i32, i32
  }
  func.func @transform_6(%arg0: i32) -> (i32, i32) {
    %c0_i32 = arith.constant 0 : i32
    %c0_i32_0 = arith.constant 0 : i32
    %c0_i32_1 = arith.constant 0 : i32
    return %c0_i32, %c0_i32_0 : i32, i32
  }
  func.func @transform_7(%arg0: i32) -> (i32, i32) {
    %c0_i32 = arith.constant 0 : i32
    %c0_i32_0 = arith.constant 0 : i32
    %c0_i32_1 = arith.constant 0 : i32
    return %c0_i32, %c0_i32_0 : i32, i32
  }
  func.func @transform_8(%arg0: i32) -> (i32, i32) {
    %c0_i32 = arith.constant 0 : i32
    %c0_i32_0 = arith.constant 0 : i32
    %c0_i32_1 = arith.constant 0 : i32
    return %c0_i32, %c0_i32_0 : i32, i32
  }
  func.func @transform_9(%arg0: i32) -> (i32, i32, i32) {
    %c0_i32 = arith.constant 0 : i32
    %c0_i32_0 = arith.constant 0 : i32
    %c0_i32_1 = arith.constant 0 : i32
    return %arg0, %c0_i32, %c0_i32_0 : i32, i32, i32
  }
}

</mosaic_0001>

<bundles_post_ra>
// kernel: tpu_custom_call.1
= control target key start
LH: loop header
LB: loop body
LE: loop exit
PB: predicated region body
PF: predicated region fallthrough
CT: control target
= control target key end

     0   :  { %s1665_s30 = smov 0   ;;  %s2169_s0 = inlined_call_operand.vmem [shape: bf16[2,64,16], index: 0, kind: input, shape index: {}]   ;;  %s2170_s1 = inlined_call_operand.vmem [shape: bf16[16,8], index: 1, kind: input, shape index: {}]   ;;  %s2171_s2 = inlined_call_operand.vmem [shape: f32[1,4], index: 2, kind: input, shape index: {}]   ;;  %s2172_s3 = inlined_call_operand.vmem [shape: f32[1,4], index: 3, kind: input, shape index: {}]   ;;  %s2173_s4 = inlined_call_operand.vmem [shape: f32[1,4], index: 4, kind: input, shape index: {}]   ;;  %s2174_s5 = inlined_call_operand.vmem [shape: bf16[72,8], index: 5, kind: input, shape index: {}]   ;;  %s2175_s6 = inlined_call_operand.vmem [shape: f32[1,8], index: 6, kind: input, shape index: {}]   ;;  %s2176_s7 = inlined_call_operand.vmem [shape: bf16[24,32], index: 7, kind: input, shape index: {}]   ;;  %s2177_s8 = inlined_call_operand.vmem [shape: f32[1,32], index: 8, kind: input, shape index: {}]   ;;  %s2178_s9 = inlined_call_operand.vmem [shape: bf16[2,64,32], index: 9, kind: output, shape index: {}]  }
   0x1 LB: > { %s1425_s10 = sadd.s32 4294967295, %s1603_s30   ;;  %p1429_p0 = scmp.ge.s32.totalorder %s1603_s30, 1  ;;  %s1603_s30 = sphi %s1665_s30, %s19_s30  }
   0x2   : > { %p287_p1 = scmp.lt.s32.totalorder %s1603_s30, 3 }
   0x4   : > { %p288_p2 = pnand %p1429_p0, %p287_p1 }
   0x5   : > { %v1583_v0 = vld [vmem:[%s2170_s1] sm:$0xff] (!%p288_p2)   ;;  %p323_p3 = scmp.lt.s32.totalorder (!%p288_p2), %s1425_s10, 1  ;;  %s1605_s15 = smov (!%p288_p2), 4   ;;  %vm370_vm0 = vcmask (!%p288_p2), 130048   ;;  %v1606_v6 = vmov (!%p288_p2), 0   ;;  %vm681_vm1 = vcmask (!%p288_p2), 1040384  }
   0x6   : > { %291 = sbr.rel (%p288_p2) target bundleno = 983 (0x3d7), region = 56  ;;  %v1445_v1 = vld [vmem:[%s2173_s4] ss:$0 sm:$0xff] (!%p288_p2)  ;;  %1523 = vmatprep.subr.bf16.mxu0 (!%p288_p2), %v1583_v0  ;;  %v612_v7 = vrot.slane (!%p288_p2), %v1606_v6, 7  ;;  %vm682_vm2 = vsmask.f32 (!%p288_p2), 256 }
   0x7   : > { %558 = vrot.lane.b32.xlu0 (!%p288_p2), %v1445_v1, %s1605_s15  ;;  %1524 = vmatpush3.bf16.msra.mxu0 (!%p288_p2), %v1583_v0  ;;  %vm1703_vm3 = vmand (!%p288_p2), %vm681_vm1, %vm682_vm2  ;;  %vm693_vm4 = vcmask (!%p288_p2), 1044480   ;;  %vm694_vm5 = vsmask.f32 (!%p288_p2), 4352  ;;  %s1607_s20 = smov (!%p288_p2), 48   ;;  %s1608_s21 = smov (!%p288_p2), 8   ;;  %vm448_vm7 = vcmask (!%p288_p2), 31744  }
   0x8   : > { %v684_v9 = vsel (!%p288_p2), %vm1703_vm3, 0, %v612_v7  ;;  %vm1709_vm6 = vmand (!%p288_p2), %vm693_vm4, %vm694_vm5  ;;  %s1609_s22 = smov (!%p288_p2), 16   ;;  %s1610_s23 = smov (!%p288_p2), 56   ;;  %vm1125_vm8 = vcmask (!%p288_p2), 1043456   ;;  %vm914_vm9 = vcmask (!%p288_p2), 64512   ;;  %vm947_vm10 = vcmask (!%p288_p2), 195584  }
   0x9   : > { %v1715_v11 = vsel (!%p288_p2), %vm1709_vm6, %v684_v9, 0  ;;  %s1611_s28 = smov (!%p288_p2), 24   ;;  %s1612_s29 = smov (!%p288_p2), 40   ;;  %vm964_vm11 = vcmask (!%p288_p2), 261120   ;;  %vm981_vm12 = vcmask (!%p288_p2), 326656   ;;  %vm998_vm13 = vcmask (!%p288_p2), 392192  }
   0xa   : > { %v708_v12 = vshll.u32 (!%p288_p2), %v1715_v11, 16  ;;  %v706_v13 = vshrl.u32 (!%p288_p2), %v1715_v11, 16  ;;  %v785_v16 = vrot.slane (!%p288_p2), %v1715_v11, 1  ;;  %s1613_s11 = smov (!%p288_p2), 64   ;;  %vm1015_vm14 = vcmask (!%p288_p2), 457728  }
   0xb   : > { %880 = vrot.lane.b32.xlu0 (!%p288_p2), %v1715_v11, %s1607_s20  ;;  %vm1032_vm15 = vcmask (!%p288_p2), 523264   ;;  %vm1112_vm1 = vcmask (!%p288_p2), 588800  }
   0xc   : > { %v710_v14 = vrot.slane (!%p288_p2), %v708_v12, 1  ;;  %793 = vrot.lane.b32.xlu1 (!%p288_p2), %v785_v16, %s1609_s22 }
   0xd   : > { %s2184_s10 = smov (!%p323_p3, %s1425_s10), 1 }
   0xe   : > { %s1485_s16 = sshll.u32 %s2184_s10, 5  ;;  %v711_v15 = vor.u32 %v710_v14, %v706_v13 }
   0xf   : > { %s327_s19 = scalar_lea.vmem %s2169_s0, %s1485_s16  ;;  %s2148_s15 = scalar_lea.vmem %s2178_s9, %s1485_s16 }
  0x10   : > { %v1687_v2 = vld [vmem:[%s327_s19] sm:$0xff]   ;;  %v1689_v3 = vld [vmem:[%s327_s19 + $0x8] sm:$0xff]   ;;  %v1693_v4 = vld [vmem:[%s327_s19 + $0x10] sm:$0xff]   ;;  %761 = vrot.lane.b32.xlu0 %v711_v15, %s1608_s21 }
  0x11   : > { %1525 = vmatprep.mubr.msk.bf16.mxu0 %vm370_vm0, %v1687_v2  ;;  %v1699_v5 = vld [vmem:[%s327_s19 + $0x18] sm:$0xff]   ;;  %s1614_s19 = smov 32  }
  0x12   : > { %1526 = vmatmul.mubr.msk.bf16.vlgmr.msra.gmra.mrb[0].mxu0 %vm370_vm0, %v1689_v3 }
  0x13   : > { %1529 = vmatprep.mubr.msk.bf16.mxu0 %vm370_vm0, %v1693_v4 }
  0x14   : > { %896 = vrot.lane.b32.xlu0 %v711_v15, %s1610_s23 }
  0x1a   : > { %1530 = vmatmul.mubr.msk.bf16.gmra.mrb[4].mxu0 %vm370_vm0, %v1699_v5 }
  0xe5   : > { %v1727_v17 = vpop.f32.mrb[0].mxu0 }
  0xe6   : > { %v1729_v18 = vpop.f32.mrb[1].mxu0  ;;  %v473_v22 = vmul.f32 %v1727_v17, %v1727_v17  ;;  %v452_v27 = vsel %vm448_vm7, %v1727_v17, 0.0 }
  0xe7   : > { %v471_v19 = vmul.f32 %v1729_v18, %v1729_v18  ;;  %v1733_v20 = vpop.f32.mrb[2].mxu0  ;;  %v449_v23 = vsel %vm448_vm7, %v1729_v18, 0.0 }
  0xe8   : > { %v1735_v21 = vpop.f32.mrb[3].mxu0  ;;  %v474_v29 = vmul.f32 %v1733_v20, %v1733_v20  ;;  %v482_v33 = vsel %vm448_vm7, %v473_v22, 0.0  ;;  %v454_v35 = vsel %vm448_vm7, %v1733_v20, 0.0 }
  0xe9   : > { %v450_v24 = vsel %vm448_vm7, %v1735_v21, 0.0  ;;  %v472_v25 = vmul.f32 %v1735_v21, %v1735_v21  ;;  %v479_v28 = vsel %vm448_vm7, %v471_v19, 0.0 }
  0xea   : > { %v451_v26 = vadd.f32 %v450_v24, %v449_v23  ;;  %v484_v38 = vsel %vm448_vm7, %v474_v29, 0.0 }
  0xeb   : > { %v480_v30 = vsel %vm448_vm7, %v472_v25, 0.0 }
  0xec   : > { %v453_v31 = vadd.f32 %v452_v27, %v451_v26  ;;  %v481_v32 = vadd.f32 %v480_v30, %v479_v28 }
  0xed   : > { %v1752_v34 = vpop.f32.mrb[4].mxu0 }
  0xee   : > { %v483_v36 = vadd.f32 %v482_v33, %v481_v32  ;;  %v1756_v37 = vpop.f32.mrb[5].mxu0  ;;  %v455_v39 = vadd.f32 %v454_v35, %v453_v31  ;;  %v477_v48 = vmul.f32 %v1752_v34, %v1752_v34  ;;  %v460_v52 = vsel %vm448_vm7, %v1752_v34, 0.0 }
  0xef   : > { %v456_v40 = vsel %vm448_vm7, %v1756_v37, 0.0  ;;  %v475_v41 = vmul.f32 %v1756_v37, %v1756_v37  ;;  %v1763_v42 = vpop.f32.mrb[6].mxu0 }
  0xf0   : > { %v485_v43 = vadd.f32 %v484_v38, %v483_v36  ;;  %v436_v44 = vpop.f32.mrb[7].mxu0  ;;  %v457_v45 = vadd.f32 %v456_v40, %v455_v39  ;;  %v478_v53 = vmul.f32 %v1763_v42, %v1763_v42  ;;  %v490_v57 = vsel %vm448_vm7, %v477_v48, 0.0  ;;  %v559_v39 = vpop.permute.xlu0 %558 }
  0xf1   : > { %v486_v46 = vsel %vm448_vm7, %v475_v41, 0.0  ;;  %v458_v47 = vsel %vm448_vm7, %v436_v44, 0.0  ;;  %v476_v50 = vmul.f32 %v436_v44, %v436_v44  ;;  %v462_v58 = vsel %vm448_vm7, %v1763_v42, 0.0 }
  0xf2   : > { %v487_v49 = vadd.f32 %v486_v46, %v485_v43  ;;  %v459_v51 = vadd.f32 %v458_v47, %v457_v45  ;;  %v492_v61 = vsel %vm448_vm7, %v478_v53, 0.0  ;;  %v563_v40 = vadd.f32 %v1727_v17, %v559_v39 }
  0xf3   : > { %v488_v54 = vsel %vm448_vm7, %v476_v50, 0.0  ;;  %v561_v41 = vadd.f32 %v559_v39, %v1729_v18  ;;  %v564_v43 = vadd.f32 %v1733_v20, %v559_v39  ;;  %v562_v45 = vadd.f32 %v559_v39, %v1735_v21  ;;  %v1443_v50 = vld [vmem:[%s2171_s2] ss:$0 sm:$0xff] }
  0xf4   : > { %v461_v55 = vadd.f32 %v460_v52, %v459_v51  ;;  %v489_v56 = vadd.f32 %v488_v54, %v487_v49  ;;  %v567_v47 = vadd.f32 %v1752_v34, %v559_v39  ;;  %v565_v48 = vadd.f32 %v559_v39, %v1756_v37 }
  0xf5   : > { %v568_v49 = vadd.f32 %v1763_v42, %v559_v39  ;;  %v566_v51 = vadd.f32 %v559_v39, %v436_v44 }
  0xf6   : > { %v463_v59 = vadd.f32 %v462_v58, %v461_v55  ;;  %v491_v60 = vadd.f32 %v490_v57, %v489_v56 }
  0xf8   : > { %v464_v62 = vrot.slane %v463_v59, 4  ;;  %v493_v63 = vadd.f32 %v492_v61, %v491_v60 }
  0xfa   : > { %v465_v0 = vadd.f32 %v464_v62, %v463_v59  ;;  %v494_v1 = vrot.slane %v493_v63, 4 }
  0xfc   : > { %v466_v6 = vrot.slane %v465_v0, 2  ;;  %v495_v7 = vadd.f32 %v494_v1, %v493_v63 }
  0xfe   : > { %v467_v9 = vadd.f32 %v466_v6, %v465_v0  ;;  %v496_v12 = vrot.slane %v495_v7, 2 }
 0x100   : > { %v468_v13 = vrot.slane %v467_v9, 1  ;;  %v497_v14 = vadd.f32 %v496_v12, %v495_v7 }
 0x102   : > { %v469_v15 = vadd.f32 %v468_v13, %v467_v9  ;;  %v498_v19 = vrot.slane %v497_v14, 1 }
 0x104   : > { %v470_v22 = vmul.f32 0.015625, %v469_v15  ;;  %v499_v23 = vadd.f32 %v498_v19, %v497_v14 }
 0x106   : > { %v500_v24 = vmul.f32 0.015625, %v499_v23  ;;  %v501_v25 = vmul.f32 %v470_v22, %v470_v22  ;;  %v509_v26 = vsub.f32 %v436_v44, %v470_v22  ;;  %v505_v27 = vsub.f32 %v1735_v21, %v470_v22 }
 0x107   : > { %v504_v28 = vsub.f32 %v1729_v18, %v470_v22  ;;  %v507_v29 = vsub.f32 %v1733_v20, %v470_v22  ;;  %v506_v30 = vsub.f32 %v1727_v17, %v470_v22  ;;  %v508_v31 = vsub.f32 %v1756_v37, %v470_v22  ;;  %v1444_v20 = vld [vmem:[%s2172_s3] ss:$0 sm:$0xff] }
 0x108   : > { %v502_v32 = vsub.f32 %v500_v24, %v501_v25  ;;  %v511_v33 = vsub.f32 %v1763_v42, %v470_v22  ;;  %v510_v35 = vsub.f32 %v1752_v34, %v470_v22 }
 0x10a   : > { %v503_v36 = vmax.f32 %v502_v32, 0.0 }
 0x10c   : > { %v512_v38 = vadd.f32 1e-05, %v503_v36 }
 0x10e   : > { %1595 = vrsqrt.f32 %v512_v38 }
 0x118   : > { %v1596_v46 = vpop.eup %1595 }
 0x119   : > { %v519_v52 = vmul.f32 %v1596_v46, %v509_v26  ;;  %v515_v17 = vmul.f32 %v1596_v46, %v505_v27  ;;  %v514_v53 = vmul.f32 %v1596_v46, %v504_v28  ;;  %v517_v18 = vmul.f32 %v1596_v46, %v507_v29 }
 0x11a   : > { %v516_v21 = vmul.f32 %v1596_v46, %v506_v30  ;;  %v518_v54 = vmul.f32 %v1596_v46, %v508_v31  ;;  %v521_v34 = vmul.f32 %v1596_v46, %v511_v33  ;;  %v520_v55 = vmul.f32 %v1596_v46, %v510_v35 }
 0x11b   : > { %v534_v37 = vmul.f32 %v1443_v50, %v519_v52  ;;  %v530_v56 = vmul.f32 %v1443_v50, %v515_v17  ;;  %v529_v42 = vmul.f32 %v1443_v50, %v514_v53  ;;  %v532_v57 = vmul.f32 %v1443_v50, %v517_v18 }
 0x11c   : > { %v531_v58 = vmul.f32 %v1443_v50, %v516_v21  ;;  %v533_v59 = vmul.f32 %v1443_v50, %v518_v54  ;;  %v536_v60 = vmul.f32 %v1443_v50, %v521_v34  ;;  %v535_v44 = vmul.f32 %v1443_v50, %v520_v55 }
 0x11d   : > { %v549_v61 = vadd.f32 %v1444_v20, %v534_v37  ;;  %v545_v62 = vadd.f32 %v1444_v20, %v530_v56  ;;  %v544_v63 = vadd.f32 %v1444_v20, %v529_v42  ;;  %v547_v0 = vadd.f32 %v1444_v20, %v532_v57 }
 0x11e   : > { %v546_v1 = vadd.f32 %v1444_v20, %v531_v58  ;;  %v548_v6 = vadd.f32 %v1444_v20, %v533_v59  ;;  %v551_v7 = vadd.f32 %v1444_v20, %v536_v60  ;;  %v550_v9 = vadd.f32 %v1444_v20, %v535_v44 }
 0x11f   : > { %v574_v12 = vsel %vm448_vm7, %v549_v61, %v566_v51  ;;  %v570_v13 = vsel %vm448_vm7, %v545_v62, %v562_v45  ;;  %v569_v14 = vsel %vm448_vm7, %v544_v63, %v561_v41  ;;  %v572_v15 = vsel %vm448_vm7, %v547_v0, %v564_v43 }
 0x120   : > { %v582_v19 = vmax.f32 %v574_v12, 0.0  ;;  %v578_v22 = vmax.f32 %v570_v13, 0.0  ;;  %v577_v23 = vmax.f32 %v569_v14, 0.0  ;;  %v580_v24 = vmax.f32 %v572_v15, 0.0 }
 0x121   : > { %v571_v25 = vsel %vm448_vm7, %v546_v1, %v563_v40  ;;  %v573_v26 = vsel %vm448_vm7, %v548_v6, %v565_v48  ;;  %v576_v27 = vsel %vm448_vm7, %v551_v7, %v568_v49  ;;  %v575_v28 = vsel %vm448_vm7, %v550_v9, %v567_v47 }
 0x122   : > { %v1488_v29 = vpack.c.bf16 %v578_v22, %v578_v22  ;;  %v1487_v30 = vpack.c.bf16 %v577_v23, %v577_v23  ;;  %v1490_v31 = vpack.c.bf16 %v580_v24, %v580_v24  ;;  %v579_v32 = vmax.f32 %v571_v25, 0.0 }
 0x123   : > { %v581_v33 = vmax.f32 %v573_v26, 0.0  ;;  %v1492_v36 = vpack.c.bf16 %v582_v19, %v582_v19  ;;  %v584_v41 = vmax.f32 %v576_v27, 0.0  ;;  %v583_v20 = vmax.f32 %v575_v28, 0.0 }
 0x124   : > { %v624_v35 = vshrl.u32 %v1488_v29, 16  ;;  %v617_v38 = vshrl.u32 %v1487_v30, 16  ;;  %v638_v39 = vshrl.u32 %v1490_v31, 16  ;;  %v627_v45 = vshll.u32 %v1488_v29, 16 }
 0x125   : > { %v1489_v46 = vpack.c.bf16 %v579_v32, %v579_v32  ;;  %v1491_v40 = vpack.c.bf16 %v581_v33, %v581_v33  ;;  %v620_v48 = vshll.u32 %v1487_v30, 16  ;;  %v641_v49 = vshll.u32 %v1490_v31, 16 }
 0x126   : > { %v626_v43 = vrot.slane %v624_v35, 7  ;;  %v619_v50 = vrot.slane %v617_v38, 7  ;;  %v640_v51 = vrot.slane %v638_v39, 7  ;;  %v652_v55 = vshrl.u32 %v1492_v36, 16 }
 0x127   : > { %v631_v47 = vshrl.u32 %v1489_v46, 16  ;;  %v645_v17 = vshrl.u32 %v1491_v40, 16  ;;  %v634_v34 = vshll.u32 %v1489_v46, 16  ;;  %v1494_v42 = vpack.c.bf16 %v584_v41, %v584_v41  ;;  %v1588_v46 = vld [vmem:[%s2174_s5] sm:$0xff]  }
 0x128   : > { %v629_v52 = vor.u32 %v627_v45, %v626_v43  ;;  %v622_v53 = vor.u32 %v620_v48, %v619_v50  ;;  %v643_v18 = vor.u32 %v641_v49, %v640_v51  ;;  %v1493_v44 = vpack.c.bf16 %v583_v20, %v583_v20  ;;  %1533 = vmatprep.subr.bf16.mxu1 %v1588_v46 }
 0x129   : > { %v633_v54 = vrot.slane %v631_v47, 7  ;;  %v647_v60 = vrot.slane %v645_v17, 7  ;;  %v648_v62 = vshll.u32 %v1491_v40, 16  ;;  %v654_v6 = vrot.slane %v652_v55, 7  ;;  %1534 = vmatpush3.bf16.msra.mxu1 %v1588_v46 }
 0x12a   : > { %v686_v21 = vsel %vm1703_vm3, 0, %v629_v52  ;;  %v685_v56 = vsel %vm1703_vm3, 0, %v622_v53  ;;  %v688_v58 = vsel %vm1703_vm3, 0, %v643_v18  ;;  %v666_v7 = vshrl.u32 %v1494_v42, 16  ;;  %v1589_v52 = vld [vmem:[%s2174_s5 + $0x8] sm:$0xff]  }
 0x12b   : > { %v1810_v37 = vsel %vm1709_vm6, %v686_v21, 0  ;;  %v1818_v57 = vsel %vm1709_vm6, %v685_v56, 0  ;;  %v636_v59 = vor.u32 %v634_v34, %v633_v54  ;;  %v1828_v63 = vsel %vm1709_vm6, %v688_v58, 0  ;;  %1535 = vmatprep.subr.bf16.mxu1 %v1589_v52  ;;  %v1590_v21 = vld [vmem:[%s2174_s5 + $0x10] sm:$0xff]   ;;  %v1591_v56 = vld [vmem:[%s2174_s5 + $0x18] sm:$0xff]  }
 0x12c   : > { %812 = vrot.lane.b32.xlu0 %v1810_v37, %s1611_s28  ;;  %810 = vrot.lane.b32.xlu1 %v1818_v57, %s1611_s28  ;;  %v650_v1 = vor.u32 %v648_v62, %v647_v60  ;;  %v659_v9 = vshrl.u32 %v1493_v44, 16  ;;  %v655_v12 = vshll.u32 %v1492_v36, 16  ;;  %v668_v15 = vrot.slane %v666_v7, 7  ;;  %v1592_v60 = vld [vmem:[%s2174_s5 + $0x20] ss:$0 sps:$4 sm:$0xff]  }
 0x12d   : > { %v687_v61 = vsel %vm1703_vm3, 0, %v636_v59  ;;  %v669_v22 = vshll.u32 %v1494_v42, 16  ;;  %v662_v24 = vshll.u32 %v1493_v44, 16  ;;  %v786_v8 = vrot.slane %v1818_v57, 1  ;;  %1536 = vmatpush3.bf16.msra.mxu1 %v1589_v52 }
 0x12e   : > { %v1834_v0 = vsel %vm1709_vm6, %v687_v61, 0  ;;  %v689_v13 = vsel %vm1703_vm3, 0, %v650_v1  ;;  %v657_v14 = vor.u32 %v655_v12, %v654_v6  ;;  %v661_v19 = vrot.slane %v659_v9, 7  ;;  %1537 = vmatprep.subr.bf16.mxu1 %v1590_v21 }
 0x12f   : > { %v1846_v23 = vsel %vm1709_vm6, %v689_v13, 0  ;;  %v671_v26 = vor.u32 %v669_v22, %v668_v15  ;;  %v788_v10 = vrot.slane %v1834_v0, 1  ;;  %v787_v33 = vrot.slane %v1810_v37, 1 }
 0x130   : > { %816 = vrot.lane.b32.xlu0 %v1828_v63, %s1611_s28  ;;  %814 = vrot.lane.b32.xlu1 %v1834_v0, %s1611_s28  ;;  %v690_v25 = vsel %vm1703_vm3, 0, %v657_v14  ;;  %v664_v27 = vor.u32 %v662_v24, %v661_v19  ;;  %v789_v35 = vrot.slane %v1828_v63, 1  ;;  %v790_v36 = vrot.slane %v1846_v23, 1  ;;  %v1952_v19 = vpop.permute.xlu0 %880 }
 0x131   : > { %v1856_v28 = vsel %vm1709_vm6, %v690_v25, 0  ;;  %v692_v29 = vsel %vm1703_vm3, 0, %v671_v26  ;;  %v729_v43 = vshll.u32 %v1834_v0, 16  ;;  %v715_v45 = vshll.u32 %v1818_v57, 16  ;;  %1538 = vmatpush3.bf16.msra.mxu1 %v1590_v21 }
 0x132   : > { %v691_v30 = vsel %vm1703_vm3, 0, %v664_v27  ;;  %v1868_v31 = vsel %vm1709_vm6, %v692_v29, 0  ;;  %v791_v39 = vrot.slane %v1856_v28, 1  ;;  %v722_v50 = vshll.u32 %v1810_v37, 16  ;;  %1539 = vmatprep.subr.bf16.mxu1 %v1591_v56 }
 0x133   : > { %v1874_v32 = vsel %vm1709_vm6, %v691_v30, 0  ;;  %v849_v41 = vrot.slane %v1868_v31, 1  ;;  %v731_v40 = vrot.slane %v729_v43, 1  ;;  %v717_v48 = vrot.slane %v715_v45, 1  ;;  %v794_v30 = vpop.permute.xlu1 %793 }
 0x134   : > { %868 = vrot.lane.b32.xlu0 %v1834_v0, %s1607_s20  ;;  %866 = vrot.lane.b32.xlu1 %v1810_v37, %s1607_s20  ;;  %v792_v38 = vrot.slane %v1874_v32, 1  ;;  %v727_v51 = vshrl.u32 %v1834_v0, 16  ;;  %v713_v49 = vshrl.u32 %v1818_v57, 16  ;;  %v724_v17 = vrot.slane %v722_v50, 1  ;;  %v762_v27 = vpop.permute.xlu0 %761 }
 0x135   : > { %v736_v53 = vshll.u32 %v1828_v63, 16  ;;  %v720_v20 = vshrl.u32 %v1810_v37, 16  ;;  %v734_v55 = vshrl.u32 %v1828_v63, 16  ;;  %v743_v58 = vshll.u32 %v1846_v23, 16  ;;  %1540 = vmatpush3.bf16.msra.mxu1 %v1591_v56 }
 0x136   : > { %v732_v47 = vor.u32 %v731_v40, %v727_v51  ;;  %v718_v18 = vor.u32 %v717_v48, %v713_v49  ;;  %v741_v44 = vshrl.u32 %v1846_v23, 16  ;;  %1563 = vmatprep.subr.msk.bf16.mxu1 %vm1125_vm8, %v1592_v60  ;;  %v1127_v61 = vsel %vm1125_vm8, %v1592_v60, 0 }
 0x137   : > { %v725_v54 = vor.u32 %v724_v17, %v720_v20  ;;  %v738_v34 = vrot.slane %v736_v53, 1  ;;  %v745_v59 = vrot.slane %v743_v58, 1  ;;  %v757_v1 = vshll.u32 %v1874_v32, 16 }
 0x138   : > { %872 = vrot.lane.b32.xlu0 %v1846_v23, %s1607_s20  ;;  %870 = vrot.lane.b32.xlu1 %v1828_v63, %s1607_s20  ;;  %v750_v7 = vshll.u32 %v1856_v28, 16  ;;  %v755_v9 = vshrl.u32 %v1874_v32, 16  ;;  %v829_v14 = vshll.u32 %v1868_v31, 16  ;;  %v748_v15 = vshrl.u32 %v1856_v28, 16  ;;  %v1961_v29 = vpop.permute.xlu0 %896 }
 0x139   : > { %v739_v42 = vor.u32 %v738_v34, %v734_v55  ;;  %1542 = vmatpush3.bf16.msra.mxu1 %v1127_v61  ;;  %v746_v62 = vor.u32 %v745_v59, %v741_v44  ;;  %v759_v6 = vrot.slane %v757_v1, 1  ;;  %v827_v25 = vshrl.u32 %v1868_v31, 16 }
 0x13a   : > { %v752_v13 = vrot.slane %v750_v7, 1  ;;  %v831_v24 = vrot.slane %v829_v14, 1 }
 0x13b   : > { %v760_v12 = vor.u32 %v759_v6, %v755_v9 }
 0x13c   : > { %820 = vrot.lane.b32.xlu0 %v1856_v28, %s1611_s28  ;;  %818 = vrot.lane.b32.xlu1 %v1846_v23, %s1611_s28  ;;  %v753_v22 = vor.u32 %v752_v13, %v748_v15  ;;  %v832_v26 = vor.u32 %v831_v24, %v827_v25 }
 0x140   : > { %824 = vrot.lane.b32.xlu0 %v1868_v31, %s1611_s28  ;;  %822 = vrot.lane.b32.xlu1 %v1874_v32, %s1611_s28 }
 0x144   : > { %876 = vrot.lane.b32.xlu0 %v1874_v32, %s1607_s20  ;;  %874 = vrot.lane.b32.xlu1 %v1856_v28, %s1607_s20 }
 0x148   : > { %795 = vrot.lane.b32.xlu0 %v786_v8, %s1609_s22  ;;  %878 = vrot.lane.b32.xlu1 %v1868_v31, %s1607_s20 }
 0x14c   : > { %799 = vrot.lane.b32.xlu0 %v788_v10, %s1609_s22  ;;  %797 = vrot.lane.b32.xlu1 %v787_v33, %s1609_s22 }
 0x150   : > { %852 = vrot.lane.b32.xlu0 %v787_v33, %s1612_s29  ;;  %850 = vrot.lane.b32.xlu1 %v786_v8, %s1612_s29  ;;  %v916_v8 = vsel %vm914_vm9, %v1715_v11, %v762_v27 }
 0x154   : > { %856 = vrot.lane.b32.xlu0 %v789_v35, %s1612_s29  ;;  %854 = vrot.lane.b32.xlu1 %v788_v10, %s1612_s29 }
 0x158   : > { %900 = vrot.lane.b32.xlu0 %v788_v10, %s1613_s11  ;;  %898 = vrot.lane.b32.xlu1 %v787_v33, %s1613_s11  ;;  %v932_v33 = vsel %vm370_vm0, %v916_v8, %v794_v30 }
 0x15c   : > { %904 = vrot.lane.b32.xlu0 %v790_v36, %s1613_s11  ;;  %902 = vrot.lane.b32.xlu1 %v789_v35, %s1613_s11 }
 0x160   : > { %803 = vrot.lane.b32.xlu0 %v790_v36, %s1609_s22  ;;  %801 = vrot.lane.b32.xlu1 %v789_v35, %s1609_s22 }
 0x164   : > { %807 = vrot.lane.b32.xlu0 %v792_v38, %s1609_s22  ;;  %805 = vrot.lane.b32.xlu1 %v791_v39, %s1609_s22 }
 0x168   : > { %860 = vrot.lane.b32.xlu0 %v791_v39, %s1612_s29  ;;  %858 = vrot.lane.b32.xlu1 %v790_v36, %s1612_s29 }
 0x16c   : > { %864 = vrot.lane.b32.xlu0 %v849_v41, %s1612_s29  ;;  %862 = vrot.lane.b32.xlu1 %v792_v38, %s1612_s29 }
 0x170   : > { %908 = vrot.lane.b32.xlu0 %v792_v38, %s1613_s11  ;;  %906 = vrot.lane.b32.xlu1 %v791_v39, %s1613_s11 }
 0x174   : > { %767 = vrot.lane.b32.xlu0 %v732_v47, %s1608_s21  ;;  %763 = vrot.lane.b32.xlu1 %v718_v18, %s1608_s21 }
 0x178   : > { %835 = vrot.lane.b32.xlu0 %v725_v54, %s1614_s19  ;;  %765 = vrot.lane.b32.xlu1 %v725_v54, %s1608_s21 }
 0x17c   : > { %839 = vrot.lane.b32.xlu0 %v739_v42, %s1614_s19  ;;  %833 = vrot.lane.b32.xlu1 %v718_v18, %s1614_s19 }
 0x180   : > { %884 = vrot.lane.b32.xlu0 %v732_v47, %s1610_s23  ;;  %837 = vrot.lane.b32.xlu1 %v732_v47, %s1614_s19 }
 0x184   : > { %888 = vrot.lane.b32.xlu0 %v746_v62, %s1610_s23  ;;  %882 = vrot.lane.b32.xlu1 %v725_v54, %s1610_s23 }
 0x188   : > { %771 = vrot.lane.b32.xlu0 %v746_v62, %s1608_s21  ;;  %886 = vrot.lane.b32.xlu1 %v739_v42, %s1610_s23 }
 0x18c   : > { %775 = vrot.lane.b32.xlu0 %v760_v12, %s1608_s21  ;;  %769 = vrot.lane.b32.xlu1 %v739_v42, %s1608_s21 }
 0x190   : > { %843 = vrot.lane.b32.xlu0 %v753_v22, %s1614_s19  ;;  %773 = vrot.lane.b32.xlu1 %v753_v22, %s1608_s21 }
 0x194   : > { %847 = vrot.lane.b32.xlu0 %v832_v26, %s1614_s19  ;;  %841 = vrot.lane.b32.xlu1 %v746_v62, %s1614_s19 }
 0x198   : > { %892 = vrot.lane.b32.xlu0 %v760_v12, %s1610_s23  ;;  %845 = vrot.lane.b32.xlu1 %v760_v12, %s1614_s19 }
 0x19c   : > { %912 = vrot.lane.b32.xlu0 %v785_v16, %s1613_s11  ;;  %890 = vrot.lane.b32.xlu1 %v753_v22, %s1610_s23 }
 0x19e   : > { %v813_v10 = vpop.permute.xlu0 %812  ;;  %v811_v35 = vpop.permute.xlu1 %810 }
 0x19f   : > { %v949_v36 = vsel %vm947_vm10, %v932_v33, %v811_v35 }
 0x1a0   : > { %1208 = vrot.lane.b32.xlu0 %v1689_v3, %s1608_s21  ;;  %894 = vrot.lane.b32.xlu1 %v832_v26, %s1610_s23 }
 0x1a2   : > { %v817_v38 = vpop.permute.xlu0 %816  ;;  %v1975_v39 = vpop.permute.xlu1 %814 }
 0x1a4   : > { %1212 = vrot.lane.b32.xlu0 %v1699_v5, %s1608_s21  ;;  %910 = vrot.lane.b32.xlu1 %v849_v41, %s1613_s11 }
 0x1a6   : > { %v869_v11 = vpop.permute.xlu0 %868  ;;  %v1982_v16 = vpop.permute.xlu1 %866 }
 0x1a8   : > { %1206 = vrot.lane.b32.xlu1 %v1687_v2, %s1608_s21 }
 0x1aa   : > { %v1986_v43 = vpop.permute.xlu0 %872  ;;  %v1988_v3 = vpop.permute.xlu1 %870 }
 0x1ac   : > { %1210 = vrot.lane.b32.xlu1 %v1693_v4, %s1608_s21 }
 0x1ae   : > { %v1992_v45 = vpop.permute.xlu0 %820  ;;  %v1994_v5 = vpop.permute.xlu1 %818 }
 0x1b2   : > { %v1996_v46 = vpop.permute.xlu0 %824  ;;  %v1998_v31 = vpop.permute.xlu1 %822 }
 0x1b6   : > { %v2000_v41 = vpop.permute.xlu0 %876  ;;  %v2002_v40 = vpop.permute.xlu1 %874 }
 0x1ba   : > { %v796_v2 = vpop.permute.xlu0 %795  ;;  %v2004_v50 = vpop.permute.xlu1 %878 }
 0x1be   : > { %v800_v48 = vpop.permute.xlu0 %799  ;;  %v798_v51 = vpop.permute.xlu1 %797 }
 0x1c2   : > { %v853_v49 = vpop.permute.xlu0 %852  ;;  %v851_v52 = vpop.permute.xlu1 %850 }
 0x1c6   : > { %v857_v4 = vpop.permute.xlu0 %856  ;;  %v855_v47 = vpop.permute.xlu1 %854 }
 0x1ca   : > { %v901_v17 = vpop.permute.xlu0 %900  ;;  %v899_v53 = vpop.permute.xlu1 %898 }
 0x1ce   : > { %v905_v18 = vpop.permute.xlu0 %904  ;;  %v903_v20 = vpop.permute.xlu1 %902 }
 0x1d2   : > { %v2006_v21 = vpop.permute.xlu0 %803  ;;  %v2008_v54 = vpop.permute.xlu1 %801 }
 0x1d6   : > { %v2010_v34 = vpop.permute.xlu0 %807  ;;  %v2012_v55 = vpop.permute.xlu1 %805 }
 0x1da   : > { %v2014_v56 = vpop.permute.xlu0 %860  ;;  %v2016_v42 = vpop.permute.xlu1 %858 }
 0x1de   : > { %v2018_v58 = vpop.permute.xlu0 %864  ;;  %v2020_v59 = vpop.permute.xlu1 %862 }
 0x1e2   : > { %v2022_v60 = vpop.permute.xlu0 %908  ;;  %v2024_v44 = vpop.permute.xlu1 %906 }
 0x1e6   : > { %v768_v61 = vpop.permute.xlu0 %767  ;;  %v764_v62 = vpop.permute.xlu1 %763 }
 0x1e7   : > { %v918_v1 = vsel %vm914_vm9, %v1818_v57, %v764_v62  ;;  %v922_v12 = vsel %vm914_vm9, %v1834_v0, %v768_v61 }
 0x1e8   : > { %v934_v6 = vsel %vm370_vm0, %v918_v1, %v796_v2  ;;  %v938_v22 = vsel %vm370_vm0, %v922_v12, %v800_v48 }
 0x1e9   : > { %v951_v13 = vsel %vm947_vm10, %v934_v6, %v813_v10  ;;  %v955_v0 = vsel %vm947_vm10, %v938_v22, %v817_v38 }
 0x1ea   : > { %v836_v7 = vpop.permute.xlu0 %835  ;;  %v766_v9 = vpop.permute.xlu1 %765 }
 0x1eb   : > { %v920_v14 = vsel %vm914_vm9, %v1810_v37, %v766_v9  ;;  %v968_v24 = vsel %vm964_vm11, %v951_v13, %v836_v7 }
 0x1ec   : > { %v936_v25 = vsel %vm370_vm0, %v920_v14, %v798_v51  ;;  %v985_v27 = vsel %vm981_vm12, %v968_v24, %v853_v49 }
 0x1ed   : > { %v953_v33 = vsel %vm947_vm10, %v936_v25, %v1975_v39  ;;  %v1002_v35 = vsel %vm998_vm13, %v985_v27, %v869_v11 }
 0x1ee   : > { %v840_v15 = vpop.permute.xlu0 %839  ;;  %v834_v57 = vpop.permute.xlu1 %833 }
 0x1ef   : > { %v966_v26 = vsel %vm964_vm11, %v949_v36, %v834_v57  ;;  %v972_v8 = vsel %vm964_vm11, %v955_v0, %v840_v15 }
 0x1f0   : > { %v983_v10 = vsel %vm981_vm12, %v966_v26, %v851_v52  ;;  %v989_v36 = vsel %vm981_vm12, %v972_v8, %v857_v4 }
 0x1f1   : > { %v1000_v51 = vsel %vm998_vm13, %v983_v10, %v1982_v16  ;;  %v1006_v39 = vsel %vm998_vm13, %v989_v36, %v1986_v43 }
 0x1f2   : > { %v885_v30 = vpop.permute.xlu0 %884  ;;  %v838_v37 = vpop.permute.xlu1 %837 }
 0x1f3   : > { %v970_v2 = vsel %vm964_vm11, %v953_v33, %v838_v37  ;;  %v1019_v48 = vsel %vm1015_vm14, %v1002_v35, %v885_v30 }
 0x1f4   : > { %v987_v61 = vsel %vm981_vm12, %v970_v2, %v855_v47  ;;  %v1036_v62 = vsel %vm1032_vm15, %v1019_v48, %v901_v17 }
 0x1f5   : > { %v1004_v16 = vsel %vm998_vm13, %v987_v61, %v1988_v3 }
 0x1f6   : > { %v889_v38 = vpop.permute.xlu0 %888  ;;  %v883_v49 = vpop.permute.xlu1 %882 }
 0x1f7   : > { %v1017_v52 = vsel %vm1015_vm14, %v1000_v51, %v883_v49  ;;  %v1023_v4 = vsel %vm1015_vm14, %v1006_v39, %v889_v38  ;;  %v1454_v49 = vld [vmem:[%s2175_s6] ss:$0 sm:$0xff] }
 0x1f8   : > { %v1034_v11 = vsel %vm1032_vm15, %v1017_v52, %v899_v53  ;;  %v1040_v9 = vsel %vm1032_vm15, %v1023_v4, %v905_v18 }
 0x1f9   : > { %v1455_v6 = vcombine.low %v1034_v11, %v1036_v62 }
 0x1fa   : > { %v772_v1 = vpop.permute.xlu0 %771  ;;  %v887_v7 = vpop.permute.xlu1 %886 }
 0x1fb   : > { %v1021_v47 = vsel %vm1015_vm14, %v1004_v16, %v887_v7  ;;  %1543 = vmatprep.mubr.msk.bf16.mxu1 %vm1112_vm1, %v1455_v6  ;;  %v926_v13 = vsel %vm914_vm9, %v1846_v23, %v772_v1 }
 0x1fc   : > { %v1038_v43 = vsel %vm1032_vm15, %v1021_v47, %v903_v20  ;;  %v942_v15 = vsel %vm370_vm0, %v926_v13, %v2006_v21 }
 0x1fd   : > { %v1456_v53 = vcombine.low %v1038_v43, %v1040_v9  ;;  %v959_v20 = vsel %vm947_vm10, %v942_v15, %v1992_v45 }
 0x1fe   : > { %v776_v12 = vpop.permute.xlu0 %775  ;;  %v770_v17 = vpop.permute.xlu1 %769 }
 0x1ff   : > { %1544 = vmatmul.mubr.msk.bf16.vlgmr.msra.gmra.mrb[0].mxu1 %vm1112_vm1, %v1456_v53  ;;  %v924_v3 = vsel %vm914_vm9, %v1828_v63, %v770_v17  ;;  %v930_v23 = vsel %vm914_vm9, %v1874_v32, %v776_v12 }
 0x200   : > { %v940_v18 = vsel %vm370_vm0, %v924_v3, %v2008_v54  ;;  %v946_v54 = vsel %vm370_vm0, %v930_v23, %v2010_v34 }
 0x201   : > { %v957_v63 = vsel %vm947_vm10, %v940_v18, %v1994_v5  ;;  %v963_v5 = vsel %vm947_vm10, %v946_v54, %v1996_v46 }
 0x202   : > { %v844_v14 = vpop.permute.xlu0 %843  ;;  %v774_v22 = vpop.permute.xlu1 %773 }
 0x203   : > { %v976_v57 = vsel %vm964_vm11, %v959_v20, %v844_v14  ;;  %v928_v21 = vsel %vm914_vm9, %v1856_v28, %v774_v22 }
 0x204   : > { %v993_v45 = vsel %vm981_vm12, %v976_v57, %v2014_v56  ;;  %v944_v32 = vsel %vm370_vm0, %v928_v21, %v2012_v55  ;;  %vm1361_vm0 = vcmask 257024  }
 0x205   : > { %v1010_v28 = vsel %vm998_vm13, %v993_v45, %v2000_v41  ;;  %v961_v56 = vsel %vm947_vm10, %v944_v32, %v1998_v31 }
 0x206   : > { %v848_v24 = vpop.permute.xlu0 %847  ;;  %v842_v25 = vpop.permute.xlu1 %841 }
 0x207   : > { %v974_v26 = vsel %vm964_vm11, %v957_v63, %v842_v25  ;;  %v980_v8 = vsel %vm964_vm11, %v963_v5, %v848_v24  ;;  %v1468_v5 = vld [vmem:[%s2177_s8] ss:$0 sm:$0xff] }
 0x208   : > { %v991_v30 = vsel %vm981_vm12, %v974_v26, %v2016_v42  ;;  %v997_v46 = vsel %vm981_vm12, %v980_v8, %v2018_v58 }
 0x209   : > { %v1008_v37 = vsel %vm998_vm13, %v991_v30, %v2002_v40  ;;  %v1014_v40 = vsel %vm998_vm13, %v997_v46, %v1952_v19  ;;  %v1593_v19 = vld [vmem:[%s2176_s7] sm:$0xff]  }
 0x20a   : > { %v893_v27 = vpop.permute.xlu0 %892  ;;  %v846_v0 = vpop.permute.xlu1 %845  ;;  %1551 = vmatprep.subr.bf16.mxu0 %v1593_v19 }
 0x20b   : > { %v1027_v34 = vsel %vm1015_vm14, %v1010_v28, %v893_v27  ;;  %v978_v10 = vsel %vm964_vm11, %v961_v56, %v846_v0  ;;  %1552 = vmatpush3.bf16.msra.mxu0 %v1593_v19 }
 0x20c   : > { %v1044_v41 = vsel %vm1032_vm15, %v1027_v34, %v2022_v60  ;;  %v995_v31 = vsel %vm981_vm12, %v978_v10, %v2020_v59  ;;  %v1031_v60 = vsel %vm1015_vm14, %v1014_v40, %v1961_v29 }
 0x20d   : > { %v1012_v58 = vsel %vm998_vm13, %v995_v31, %v2004_v50  ;;  %v1594_v50 = vld [vmem:[%s2176_s7 + $0x8] ss:$0 sps:$4 sm:$0xff]  }
 0x20e   : > { %v891_v55 = vpop.permute.xlu1 %890  ;;  %v913_v36 = vpop.permute.xlu0 %912  ;;  %1564 = vmatprep.subr.msk.bf16.mxu0 %vm1125_vm8, %v1594_v50  ;;  %v1254_v29 = vsel %vm1125_vm8, %v1594_v50, 0 }
 0x20f   : > { %v1025_v42 = vsel %vm1015_vm14, %v1008_v37, %v891_v55  ;;  %v1048_v38 = vsel %vm1032_vm15, %v1031_v60, %v913_v36  ;;  %1554 = vmatpush3.bf16.msra.mxu0 %v1254_v29 }
 0x210   : > { %v1042_v33 = vsel %vm1032_vm15, %v1025_v42, %v2024_v44 }
 0x211   : > { %v1457_v35 = vcombine.low %v1042_v33, %v1044_v41 }
 0x212   : > { %v895_v2 = vpop.permute.xlu1 %894  ;;  %v1209_v17 = vpop.permute.xlu0 %1208 }
 0x213   : > { %1547 = vmatprep.mubr.msk.bf16.mxu1 %vm1112_vm1, %v1457_v35  ;;  %v1029_v48 = vsel %vm1015_vm14, %v1012_v58, %v895_v2 }
 0x216   : > { %v911_v44 = vpop.permute.xlu1 %910  ;;  %v1213_v0 = vpop.permute.xlu0 %1212 }
 0x217   : > { %v1046_v59 = vsel %vm1032_vm15, %v1029_v48, %v911_v44 }
 0x218   : > { %v1458_v51 = vcombine.low %v1046_v59, %v1048_v38 }
 0x21a   : > { %1548 = vmatmul.mubr.msk.bf16.gmra.mrb[4].mxu1 %vm1112_vm1, %v1458_v51  ;;  %v1207_v53 = vpop.permute.xlu1 %1206 }
 0x21e   : > { %v1211_v45 = vpop.permute.xlu1 %1210 }
 0x2d2   : > { %v1545_v61 = vpop.f32.mrb[0].mxu1 }
 0x2d3   : > { %v1172_v52 = vadd.f32 %v1545_v61, %v1454_v49  ;;  %v1163_v39 = vpop.f32.mrb[1].mxu1 }
 0x2d4   : > { %v1164_v11 = vadd.f32 %v1454_v49, %v1163_v39  ;;  %v1546_v62 = vpop.f32.mrb[2].mxu1 }
 0x2d5   : > { %v1175_v4 = vadd.f32 %v1546_v62, %v1454_v49  ;;  %v1166_v1 = vpop.f32.mrb[3].mxu1  ;;  %v1196_v16 = vmax.f32 %v1172_v52, 0.0 }
 0x2d6   : > { %v1167_v6 = vadd.f32 %v1454_v49, %v1166_v1  ;;  %v1194_v47 = vmax.f32 %v1164_v11, 0.0 }
 0x2d7   : > { %v1197_v7 = vmax.f32 %v1175_v4, 0.0 }
 0x2d8   : > { %v1195_v9 = vmax.f32 %v1167_v6, 0.0 }
 0x2d9   : > { %v1203_v43 = vpack.c.bf16 %v1197_v7, %v1196_v16 }
 0x2da   : > { %v1202_v12 = vpack.c.bf16 %v1195_v9, %v1194_v47 }
 0x2db   : > { %v1219_v3 = vsel %vm914_vm9, %v1203_v43, %v1209_v17 }
 0x2dc   : > { %v1216_v13 = vsel %vm914_vm9, %v1202_v12, %v1207_v53 }
 0x2dd   : > { %1555 = vmatprep.mubr.msk.bf16.mxu0 %vm947_vm10, %v1216_v13 }
 0x2de   : > { %1556 = vmatmul.mubr.msk.bf16.vlgmr.msra.gmra.mrb[8].mxu0 %vm947_vm10, %v1219_v3 }
 0x2ed   : > { %v1549_v14 = vpop.f32.mrb[4].mxu1 }
 0x2ee   : > { %v1188_v15 = vadd.f32 %v1549_v14, %v1454_v49  ;;  %v1179_v22 = vpop.f32.mrb[5].mxu1 }
 0x2ef   : > { %v1180_v18 = vadd.f32 %v1454_v49, %v1179_v22  ;;  %v1550_v20 = vpop.f32.mrb[6].mxu1 }
 0x2f0   : > { %v1191_v24 = vadd.f32 %v1550_v20, %v1454_v49  ;;  %v1182_v23 = vpop.f32.mrb[7].mxu1  ;;  %v1200_v25 = vmax.f32 %v1188_v15, 0.0 }
 0x2f1   : > { %v1183_v57 = vadd.f32 %v1454_v49, %v1182_v23  ;;  %v1198_v21 = vmax.f32 %v1180_v18, 0.0 }
 0x2f2   : > { %v1201_v63 = vmax.f32 %v1191_v24, 0.0 }
 0x2f3   : > { %v1199_v26 = vmax.f32 %v1183_v57, 0.0 }
 0x2f4   : > { %v1205_v54 = vpack.c.bf16 %v1201_v63, %v1200_v25 }
 0x2f5   : > { %v1204_v27 = vpack.c.bf16 %v1199_v26, %v1198_v21 }
 0x2f6   : > { %v1225_v30 = vsel %vm914_vm9, %v1205_v54, %v1213_v0 }
 0x2f7   : > { %v1222_v32 = vsel %vm914_vm9, %v1204_v27, %v1211_v45 }
 0x2f8   : > { %1559 = vmatprep.mubr.msk.bf16.mxu0 %vm947_vm10, %v1222_v32 }
 0x2f9   : > { %1560 = vmatmul.mubr.msk.bf16.gmra.mrb[12].mxu0 %vm947_vm10, %v1225_v30 }
 0x3b1   : > { %v1557_v28 = vpop.f32.mrb[8].mxu0 }
 0x3b2   : > { %v1299_v8 = vadd.f32 %v1557_v28, %v1468_v5  ;;  %v1290_v34 = vpop.f32.mrb[9].mxu0 }
 0x3b3   : > { %v1291_v56 = vadd.f32 %v1468_v5, %v1290_v34  ;;  %v1558_v37 = vpop.f32.mrb[10].mxu0 }
 0x3b4   : > { %v1323_v55 = vmax.f32 %v1299_v8, 0.0  ;;  %v1302_v10 = vadd.f32 %v1558_v37, %v1468_v5  ;;  %v1293_v42 = vpop.f32.mrb[11].mxu0 }
 0x3b5   : > { %v1321_v46 = vmax.f32 %v1291_v56, 0.0  ;;  %v1294_v41 = vadd.f32 %v1468_v5, %v1293_v42 }
 0x3b6   : > { %v1497_v33 = vpack.c.bf16 %v1323_v55, %v1323_v55  ;;  %v1324_v35 = vmax.f32 %v1302_v10, 0.0 }
 0x3b7   : > { %v1495_v31 = vpack.c.bf16 %v1321_v46, %v1321_v46  ;;  %v1322_v2 = vmax.f32 %v1294_v41, 0.0 }
 0x3b8   : > { %1364 = vst.msk [vmem:[%s2148_s15 + $0x8] sm:$0xf] %vm1361_vm0, %v1497_v33  ;;  %v1498_v40 = vpack.c.bf16 %v1324_v35, %v1324_v35 }
 0x3b9   : > { %1362 = vst.msk [vmem:[%s2148_s15] sm:$0xf] %vm1361_vm0, %v1495_v31  ;;  %v1496_v36 = vpack.c.bf16 %v1322_v2, %v1322_v2 }
 0x3ba   : > { %1365 = vst.msk [vmem:[%s2148_s15 + $0xc] sm:$0xf] %vm1361_vm0, %v1498_v40 }
 0x3bb   : > { %1363 = vst.msk [vmem:[%s2148_s15 + $0x4] sm:$0xf] %vm1361_vm0, %v1496_v36 }
 0x3cc   : > { %v1561_v58 = vpop.f32.mrb[12].mxu0 }
 0x3cd   : > { %v1315_v60 = vadd.f32 %v1561_v58, %v1468_v5  ;;  %v1306_v48 = vpop.f32.mrb[13].mxu0 }
 0x3ce   : > { %v1307_v44 = vadd.f32 %v1468_v5, %v1306_v48  ;;  %v1562_v38 = vpop.f32.mrb[14].mxu0 }
 0x3cf   : > { %v1327_v59 = vmax.f32 %v1315_v60, 0.0  ;;  %v1318_v51 = vadd.f32 %v1562_v38, %v1468_v5  ;;  %v1309_v19 = vpop.f32.mrb[15].mxu0 }
 0x3d0   : > { %v1325_v50 = vmax.f32 %v1307_v44, 0.0  ;;  %v1310_v29 = vadd.f32 %v1468_v5, %v1309_v19 }
 0x3d1   : > { %v1501_v49 = vpack.c.bf16 %v1327_v59, %v1327_v59  ;;  %v1328_v61 = vmax.f32 %v1318_v51, 0.0 }
 0x3d2   : > { %v1499_v52 = vpack.c.bf16 %v1325_v50, %v1325_v50  ;;  %v1326_v39 = vmax.f32 %v1310_v29, 0.0 }
 0x3d3   : > { %1368 = vst.msk [vmem:[%s2148_s15 + $0x18] sm:$0xf] %vm1361_vm0, %v1501_v49  ;;  %v1502_v11 = vpack.c.bf16 %v1328_v61, %v1328_v61 }
 0x3d4   : > { %1366 = vst.msk [vmem:[%s2148_s15 + $0x10] sm:$0xf] %vm1361_vm0, %v1499_v52  ;;  %v1500_v62 = vpack.c.bf16 %v1326_v39, %v1326_v39 }
 0x3d5   : > { %1369 = vst.msk [vmem:[%s2148_s15 + $0x1c] sm:$0xf] %vm1361_vm0, %v1502_v11 }
 0x3d6   : > { %1367 = vst.msk [vmem:[%s2148_s15 + $0x14] sm:$0xf] %vm1361_vm0, %v1500_v62 }
 0x3d7 PF: > { %s19_s30 = sadd.s32 1, %s1603_s30  }
 0x3d8   : > { %p16_p4 = scmp.ge.s32.totalorder %s19_s30, 4  }
 0x3da   :  { %18 = sbr.rel (!%p16_p4) target bundleno = 1 (0x1), region = 86 }

// kernel: tpu_custom_call.1
= control target key start
LH: loop header
LB: loop body
LE: loop exit
PB: predicated region body
PF: predicated region fallthrough
CT: control target
= control target key end

     0   :  { %s1665_s30 = smov 0   ;;  %s2169_s0 = inlined_call_operand.vmem [shape: bf16[2,64,16], index: 0, kind: input, shape index: {}]   ;;  %s2170_s1 = inlined_call_operand.vmem [shape: bf16[16,8], index: 1, kind: input, shape index: {}]   ;;  %s2171_s2 = inlined_call_operand.vmem [shape: f32[1,4], index: 2, kind: input, shape index: {}]   ;;  %s2172_s3 = inlined_call_operand.vmem [shape: f32[1,4], index: 3, kind: input, shape index: {}]   ;;  %s2173_s4 = inlined_call_operand.vmem [shape: f32[1,4], index: 4, kind: input, shape index: {}]   ;;  %s2174_s5 = inlined_call_operand.vmem [shape: bf16[72,8], index: 5, kind: input, shape index: {}]   ;;  %s2175_s6 = inlined_call_operand.vmem [shape: f32[1,8], index: 6, kind: input, shape index: {}]   ;;  %s2176_s7 = inlined_call_operand.vmem [shape: bf16[24,32], index: 7, kind: input, shape index: {}]   ;;  %s2177_s8 = inlined_call_operand.vmem [shape: f32[1,32], index: 8, kind: input, shape index: {}]   ;;  %s2178_s9 = inlined_call_operand.vmem [shape: bf16[2,64,32], index: 9, kind: output, shape index: {}]  }
   0x1 LB: > { %s1425_s10 = sadd.s32 4294967295, %s1603_s30   ;;  %p1429_p0 = scmp.ge.s32.totalorder %s1603_s30, 1  ;;  %s1603_s30 = sphi %s1665_s30, %s19_s30  }
   0x2   : > { %p287_p1 = scmp.lt.s32.totalorder %s1603_s30, 3 }
   0x4   : > { %p288_p2 = pnand %p1429_p0, %p287_p1 }
   0x5   : > { %v1583_v0 = vld [vmem:[%s2170_s1] sm:$0xff] (!%p288_p2)   ;;  %p323_p3 = scmp.lt.s32.totalorder (!%p288_p2), %s1425_s10, 1  ;;  %s1605_s15 = smov (!%p288_p2), 4   ;;  %vm370_vm0 = vcmask (!%p288_p2), 130048   ;;  %v1606_v6 = vmov (!%p288_p2), 0   ;;  %vm681_vm1 = vcmask (!%p288_p2), 1040384  }
   0x6   : > { %291 = sbr.rel (%p288_p2) target bundleno = 983 (0x3d7), region = 56  ;;  %v1445_v1 = vld [vmem:[%s2173_s4] ss:$0 sm:$0xff] (!%p288_p2)  ;;  %1523 = vmatprep.subr.bf16.mxu0 (!%p288_p2), %v1583_v0  ;;  %v612_v7 = vrot.slane (!%p288_p2), %v1606_v6, 7  ;;  %vm682_vm2 = vsmask.f32 (!%p288_p2), 256 }
   0x7   : > { %558 = vrot.lane.b32.xlu0 (!%p288_p2), %v1445_v1, %s1605_s15  ;;  %1524 = vmatpush3.bf16.msra.mxu0 (!%p288_p2), %v1583_v0  ;;  %vm1703_vm3 = vmand (!%p288_p2), %vm681_vm1, %vm682_vm2  ;;  %vm693_vm4 = vcmask (!%p288_p2), 1044480   ;;  %vm694_vm5 = vsmask.f32 (!%p288_p2), 4352  ;;  %s1607_s20 = smov (!%p288_p2), 48   ;;  %s1608_s21 = smov (!%p288_p2), 8   ;;  %vm448_vm7 = vcmask (!%p288_p2), 31744  }
   0x8   : > { %v684_v9 = vsel (!%p288_p2), %vm1703_vm3, 0, %v612_v7  ;;  %vm1709_vm6 = vmand (!%p288_p2), %vm693_vm4, %vm694_vm5  ;;  %s1609_s22 = smov (!%p288_p2), 16   ;;  %s1610_s23 = smov (!%p288_p2), 56   ;;  %vm1125_vm8 = vcmask (!%p288_p2), 1043456   ;;  %vm914_vm9 = vcmask (!%p288_p2), 64512   ;;  %vm947_vm10 = vcmask (!%p288_p2), 195584  }
   0x9   : > { %v1715_v11 = vsel (!%p288_p2), %vm1709_vm6, %v684_v9, 0  ;;  %s1611_s28 = smov (!%p288_p2), 24   ;;  %s1612_s29 = smov (!%p288_p2), 40   ;;  %vm964_vm11 = vcmask (!%p288_p2), 261120   ;;  %vm981_vm12 = vcmask (!%p288_p2), 326656   ;;  %vm998_vm13 = vcmask (!%p288_p2), 392192  }
   0xa   : > { %v708_v12 = vshll.u32 (!%p288_p2), %v1715_v11, 16  ;;  %v706_v13 = vshrl.u32 (!%p288_p2), %v1715_v11, 16  ;;  %v785_v16 = vrot.slane (!%p288_p2), %v1715_v11, 1  ;;  %s1613_s11 = smov (!%p288_p2), 64   ;;  %vm1015_vm14 = vcmask (!%p288_p2), 457728  }
   0xb   : > { %880 = vrot.lane.b32.xlu0 (!%p288_p2), %v1715_v11, %s1607_s20  ;;  %vm1032_vm15 = vcmask (!%p288_p2), 523264   ;;  %vm1112_vm1 = vcmask (!%p288_p2), 588800  }
   0xc   : > { %v710_v14 = vrot.slane (!%p288_p2), %v708_v12, 1  ;;  %793 = vrot.lane.b32.xlu1 (!%p288_p2), %v785_v16, %s1609_s22 }
   0xd   : > { %s2184_s10 = smov (!%p323_p3, %s1425_s10), 1 }
   0xe   : > { %s1485_s16 = sshll.u32 %s2184_s10, 5  ;;  %v711_v15 = vor.u32 %v710_v14, %v706_v13 }
   0xf   : > { %s327_s19 = scalar_lea.vmem %s2169_s0, %s1485_s16  ;;  %s2148_s15 = scalar_lea.vmem %s2178_s9, %s1485_s16 }
  0x10   : > { %v1687_v2 = vld [vmem:[%s327_s19] sm:$0xff]   ;;  %v1689_v3 = vld [vmem:[%s327_s19 + $0x8] sm:$0xff]   ;;  %v1693_v4 = vld [vmem:[%s327_s19 + $0x10] sm:$0xff]   ;;  %761 = vrot.lane.b32.xlu0 %v711_v15, %s1608_s21 }
  0x11   : > { %1525 = vmatprep.mubr.msk.bf16.mxu0 %vm370_vm0, %v1687_v2  ;;  %v1699_v5 = vld [vmem:[%s327_s19 + $0x18] sm:$0xff]   ;;  %s1614_s19 = smov 32  }
  0x12   : > { %1526 = vmatmul.mubr.msk.bf16.vlgmr.msra.gmra.mrb[0].mxu0 %vm370_vm0, %v1689_v3 }
  0x13   : > { %1529 = vmatprep.mubr.msk.bf16.mxu0 %vm370_vm0, %v1693_v4 }
  0x14   : > { %896 = vrot.lane.b32.xlu0 %v711_v15, %s1610_s23 }
  0x1a   : > { %1530 = vmatmul.mubr.msk.bf16.gmra.mrb[4].mxu0 %vm370_vm0, %v1699_v5 }
  0xe5   : > { %v1727_v17 = vpop.f32.mrb[0].mxu0 }
  0xe6   : > { %v1729_v18 = vpop.f32.mrb[1].mxu0  ;;  %v473_v22 = vmul.f32 %v1727_v17, %v1727_v17  ;;  %v452_v27 = vsel %vm448_vm7, %v1727_v17, 0.0 }
  0xe7   : > { %v471_v19 = vmul.f32 %v1729_v18, %v1729_v18  ;;  %v1733_v20 = vpop.f32.mrb[2].mxu0  ;;  %v449_v23 = vsel %vm448_vm7, %v1729_v18, 0.0 }
  0xe8   : > { %v1735_v21 = vpop.f32.mrb[3].mxu0  ;;  %v474_v29 = vmul.f32 %v1733_v20, %v1733_v20  ;;  %v482_v33 = vsel %vm448_vm7, %v473_v22, 0.0  ;;  %v454_v35 = vsel %vm448_vm7, %v1733_v20, 0.0 }
  0xe9   : > { %v450_v24 = vsel %vm448_vm7, %v1735_v21, 0.0  ;;  %v472_v25 = vmul.f32 %v1735_v21, %v1735_v21  ;;  %v479_v28 = vsel %vm448_vm7, %v471_v19, 0.0 }
  0xea   : > { %v451_v26 = vadd.f32 %v450_v24, %v449_v23  ;;  %v484_v38 = vsel %vm448_vm7, %v474_v29, 0.0 }
  0xeb   : > { %v480_v30 = vsel %vm448_vm7, %v472_v25, 0.0 }
  0xec   : > { %v453_v31 = vadd.f32 %v452_v27, %v451_v26  ;;  %v481_v32 = vadd.f32 %v480_v30, %v479_v28 }
  0xed   : > { %v1752_v34 = vpop.f32.mrb[4].mxu0 }
  0xee   : > { %v483_v36 = vadd.f32 %v482_v33, %v481_v32  ;;  %v1756_v37 = vpop.f32.mrb[5].mxu0  ;;  %v455_v39 = vadd.f32 %v454_v35, %v453_v31  ;;  %v477_v48 = vmul.f32 %v1752_v34, %v1752_v34  ;;  %v460_v52 = vsel %vm448_vm7, %v1752_v34, 0.0 }
  0xef   : > { %v456_v40 = vsel %vm448_vm7, %v1756_v37, 0.0  ;;  %v475_v41 = vmul.f32 %v1756_v37, %v1756_v37  ;;  %v1763_v42 = vpop.f32.mrb[6].mxu0 }
  0xf0   : > { %v485_v43 = vadd.f32 %v484_v38, %v483_v36  ;;  %v436_v44 = vpop.f32.mrb[7].mxu0  ;;  %v457_v45 = vadd.f32 %v456_v40, %v455_v39  ;;  %v478_v53 = vmul.f32 %v1763_v42, %v1763_v42  ;;  %v490_v57 = vsel %vm448_vm7, %v477_v48, 0.0  ;;  %v559_v39 = vpop.permute.xlu0 %558 }
  0xf1   : > { %v486_v46 = vsel %vm448_vm7, %v475_v41, 0.0  ;;  %v458_v47 = vsel %vm448_vm7, %v436_v44, 0.0  ;;  %v476_v50 = vmul.f32 %v436_v44, %v436_v44  ;;  %v462_v58 = vsel %vm448_vm7, %v1763_v42, 0.0 }
  0xf2   : > { %v487_v49 = vadd.f32 %v486_v46, %v485_v43  ;;  %v459_v51 = vadd.f32 %v458_v47, %v457_v45  ;;  %v492_v61 = vsel %vm448_vm7, %v478_v53, 0.0  ;;  %v563_v40 = vadd.f32 %v1727_v17, %v559_v39 }
  0xf3   : > { %v488_v54 = vsel %vm448_vm7, %v476_v50, 0.0  ;;  %v561_v41 = vadd.f32 %v559_v39, %v1729_v18  ;;  %v564_v43 = vadd.f32 %v1733_v20, %v559_v39  ;;  %v562_v45 = vadd.f32 %v559_v39, %v1735_v21  ;;  %v1443_v50 = vld [vmem:[%s2171_s2] ss:$0 sm:$0xff] }
  0xf4   : > { %v461_v55 = vadd.f32 %v460_v52, %v459_v51  ;;  %v489_v56 = vadd.f32 %v488_v54, %v487_v49  ;;  %v567_v47 = vadd.f32 %v1752_v34, %v559_v39  ;;  %v565_v48 = vadd.f32 %v559_v39, %v1756_v37 }
  0xf5   : > { %v568_v49 = vadd.f32 %v1763_v42, %v559_v39  ;;  %v566_v51 = vadd.f32 %v559_v39, %v436_v44 }
  0xf6   : > { %v463_v59 = vadd.f32 %v462_v58, %v461_v55  ;;  %v491_v60 = vadd.f32 %v490_v57, %v489_v56 }
  0xf8   : > { %v464_v62 = vrot.slane %v463_v59, 4  ;;  %v493_v63 = vadd.f32 %v492_v61, %v491_v60 }
  0xfa   : > { %v465_v0 = vadd.f32 %v464_v62, %v463_v59  ;;  %v494_v1 = vrot.slane %v493_v63, 4 }
  0xfc   : > { %v466_v6 = vrot.slane %v465_v0, 2  ;;  %v495_v7 = vadd.f32 %v494_v1, %v493_v63 }
  0xfe   : > { %v467_v9 = vadd.f32 %v466_v6, %v465_v0  ;;  %v496_v12 = vrot.slane %v495_v7, 2 }
 0x100   : > { %v468_v13 = vrot.slane %v467_v9, 1  ;;  %v497_v14 = vadd.f32 %v496_v12, %v495_v7 }
 0x102   : > { %v469_v15 = vadd.f32 %v468_v13, %v467_v9  ;;  %v498_v19 = vrot.slane %v497_v14, 1 }
 0x104   : > { %v470_v22 = vmul.f32 0.015625, %v469_v15  ;;  %v499_v23 = vadd.f32 %v498_v19, %v497_v14 }
 0x106   : > { %v500_v24 = vmul.f32 0.015625, %v499_v23  ;;  %v501_v25 = vmul.f32 %v470_v22, %v470_v22  ;;  %v509_v26 = vsub.f32 %v436_v44, %v470_v22  ;;  %v505_v27 = vsub.f32 %v1735_v21, %v470_v22 }
 0x107   : > { %v504_v28 = vsub.f32 %v1729_v18, %v470_v22  ;;  %v507_v29 = vsub.f32 %v1733_v20, %v470_v22  ;;  %v506_v30 = vsub.f32 %v1727_v17, %v470_v22  ;;  %v508_v31 = vsub.f32 %v1756_v37, %v470_v22  ;;  %v1444_v20 = vld [vmem:[%s2172_s3] ss:$0 sm:$0xff] }
 0x108   : > { %v502_v32 = vsub.f32 %v500_v24, %v501_v25  ;;  %v511_v33 = vsub.f32 %v1763_v42, %v470_v22  ;;  %v510_v35 = vsub.f32 %v1752_v34, %v470_v22 }
 0x10a   : > { %v503_v36 = vmax.f32 %v502_v32, 0.0 }
 0x10c   : > { %v512_v38 = vadd.f32 1e-05, %v503_v36 }
 0x10e   : > { %1595 = vrsqrt.f32 %v512_v38 }
 0x118   : > { %v1596_v46 = vpop.eup %1595 }
 0x119   : > { %v519_v52 = vmul.f32 %v1596_v46, %v509_v26  ;;  %v515_v17 = vmul.f32 %v1596_v46, %v505_v27  ;;  %v514_v53 = vmul.f32 %v1596_v46, %v504_v28  ;;  %v517_v18 = vmul.f32 %v1596_v46, %v507_v29 }
 0x11a   : > { %v516_v21 = vmul.f32 %v1596_v46, %v506_v30  ;;  %v518_v54 = vmul.f32 %v1596_v46, %v508_v31  ;;  %v521_v34 = vmul.f32 %v1596_v46, %v511_v33  ;;  %v520_v55 = vmul.f32 %v1596_v46, %v510_v35 }
 0x11b   : > { %v534_v37 = vmul.f32 %v1443_v50, %v519_v52  ;;  %v530_v56 = vmul.f32 %v1443_v50, %v515_v17  ;;  %v529_v42 = vmul.f32 %v1443_v50, %v514_v53  ;;  %v532_v57 = vmul.f32 %v1443_v50, %v517_v18 }
 0x11c   : > { %v531_v58 = vmul.f32 %v1443_v50, %v516_v21  ;;  %v533_v59 = vmul.f32 %v1443_v50, %v518_v54  ;;  %v536_v60 = vmul.f32 %v1443_v50, %v521_v34  ;;  %v535_v44 = vmul.f32 %v1443_v50, %v520_v55 }
 0x11d   : > { %v549_v61 = vadd.f32 %v1444_v20, %v534_v37  ;;  %v545_v62 = vadd.f32 %v1444_v20, %v530_v56  ;;  %v544_v63 = vadd.f32 %v1444_v20, %v529_v42  ;;  %v547_v0 = vadd.f32 %v1444_v20, %v532_v57 }
 0x11e   : > { %v546_v1 = vadd.f32 %v1444_v20, %v531_v58  ;;  %v548_v6 = vadd.f32 %v1444_v20, %v533_v59  ;;  %v551_v7 = vadd.f32 %v1444_v20, %v536_v60  ;;  %v550_v9 = vadd.f32 %v1444_v20, %v535_v44 }
 0x11f   : > { %v574_v12 = vsel %vm448_vm7, %v549_v61, %v566_v51  ;;  %v570_v13 = vsel %vm448_vm7, %v545_v62, %v562_v45  ;;  %v569_v14 = vsel %vm448_vm7, %v544_v63, %v561_v41  ;;  %v572_v15 = vsel %vm448_vm7, %v547_v0, %v564_v43 }
 0x120   : > { %v582_v19 = vmax.f32 %v574_v12, 0.0  ;;  %v578_v22 = vmax.f32 %v570_v13, 0.0  ;;  %v577_v23 = vmax.f32 %v569_v14, 0.0  ;;  %v580_v24 = vmax.f32 %v572_v15, 0.0 }
 0x121   : > { %v571_v25 = vsel %vm448_vm7, %v546_v1, %v563_v40  ;;  %v573_v26 = vsel %vm448_vm7, %v548_v6, %v565_v48  ;;  %v576_v27 = vsel %vm448_vm7, %v551_v7, %v568_v49  ;;  %v575_v28 = vsel %vm448_vm7, %v550_v9, %v567_v47 }
 0x122   : > { %v1488_v29 = vpack.c.bf16 %v578_v22, %v578_v22  ;;  %v1487_v30 = vpack.c.bf16 %v577_v23, %v577_v23  ;;  %v1490_v31 = vpack.c.bf16 %v580_v24, %v580_v24  ;;  %v579_v32 = vmax.f32 %v571_v25, 0.0 }
 0x123   : > { %v581_v33 = vmax.f32 %v573_v26, 0.0  ;;  %v1492_v36 = vpack.c.bf16 %v582_v19, %v582_v19  ;;  %v584_v41 = vmax.f32 %v576_v27, 0.0  ;;  %v583_v20 = vmax.f32 %v575_v28, 0.0 }
 0x124   : > { %v624_v35 = vshrl.u32 %v1488_v29, 16  ;;  %v617_v38 = vshrl.u32 %v1487_v30, 16  ;;  %v638_v39 = vshrl.u32 %v1490_v31, 16  ;;  %v627_v45 = vshll.u32 %v1488_v29, 16 }
 0x125   : > { %v1489_v46 = vpack.c.bf16 %v579_v32, %v579_v32  ;;  %v1491_v40 = vpack.c.bf16 %v581_v33, %v581_v33  ;;  %v620_v48 = vshll.u32 %v1487_v30, 16  ;;  %v641_v49 = vshll.u32 %v1490_v31, 16 }
 0x126   : > { %v626_v43 = vrot.slane %v624_v35, 7  ;;  %v619_v50 = vrot.slane %v617_v38, 7  ;;  %v640_v51 = vrot.slane %v638_v39, 7  ;;  %v652_v55 = vshrl.u32 %v1492_v36, 16 }
 0x127   : > { %v631_v47 = vshrl.u32 %v1489_v46, 16  ;;  %v645_v17 = vshrl.u32 %v1491_v40, 16  ;;  %v634_v34 = vshll.u32 %v1489_v46, 16  ;;  %v1494_v42 = vpack.c.bf16 %v584_v41, %v584_v41  ;;  %v1588_v46 = vld [vmem:[%s2174_s5] sm:$0xff]  }
 0x128   : > { %v629_v52 = vor.u32 %v627_v45, %v626_v43  ;;  %v622_v53 = vor.u32 %v620_v48, %v619_v50  ;;  %v643_v18 = vor.u32 %v641_v49, %v640_v51  ;;  %v1493_v44 = vpack.c.bf16 %v583_v20, %v583_v20  ;;  %1533 = vmatprep.subr.bf16.mxu1 %v1588_v46 }
 0x129   : > { %v633_v54 = vrot.slane %v631_v47, 7  ;;  %v647_v60 = vrot.slane %v645_v17, 7  ;;  %v648_v62 = vshll.u32 %v1491_v40, 16  ;;  %v654_v6 = vrot.slane %v652_v55, 7  ;;  %1534 = vmatpush3.bf16.msra.mxu1 %v1588_v46 }
 0x12a   : > { %v686_v21 = vsel %vm1703_vm3, 0, %v629_v52  ;;  %v685_v56 = vsel %vm1703_vm3, 0, %v622_v53  ;;  %v688_v58 = vsel %vm1703_vm3, 0, %v643_v18  ;;  %v666_v7 = vshrl.u32 %v1494_v42, 16  ;;  %v1589_v52 = vld [vmem:[%s2174_s5 + $0x8] sm:$0xff]  }
 0x12b   : > { %v1810_v37 = vsel %vm1709_vm6, %v686_v21, 0  ;;  %v1818_v57 = vsel %vm1709_vm6, %v685_v56, 0  ;;  %v636_v59 = vor.u32 %v634_v34, %v633_v54  ;;  %v1828_v63 = vsel %vm1709_vm6, %v688_v58, 0  ;;  %1535 = vmatprep.subr.bf16.mxu1 %v1589_v52  ;;  %v1590_v21 = vld [vmem:[%s2174_s5 + $0x10] sm:$0xff]   ;;  %v1591_v56 = vld [vmem:[%s2174_s5 + $0x18] sm:$0xff]  }
 0x12c   : > { %812 = vrot.lane.b32.xlu0 %v1810_v37, %s1611_s28  ;;  %810 = vrot.lane.b32.xlu1 %v1818_v57, %s1611_s28  ;;  %v650_v1 = vor.u32 %v648_v62, %v647_v60  ;;  %v659_v9 = vshrl.u32 %v1493_v44, 16  ;;  %v655_v12 = vshll.u32 %v1492_v36, 16  ;;  %v668_v15 = vrot.slane %v666_v7, 7  ;;  %v1592_v60 = vld [vmem:[%s2174_s5 + $0x20] ss:$0 sps:$4 sm:$0xff]  }
 0x12d   : > { %v687_v61 = vsel %vm1703_vm3, 0, %v636_v59  ;;  %v669_v22 = vshll.u32 %v1494_v42, 16  ;;  %v662_v24 = vshll.u32 %v1493_v44, 16  ;;  %v786_v8 = vrot.slane %v1818_v57, 1  ;;  %1536 = vmatpush3.bf16.msra.mxu1 %v1589_v52 }
 0x12e   : > { %v1834_v0 = vsel %vm1709_vm6, %v687_v61, 0  ;;  %v689_v13 = vsel %vm1703_vm3, 0, %v650_v1  ;;  %v657_v14 = vor.u32 %v655_v12, %v654_v6  ;;  %v661_v19 = vrot.slane %v659_v9, 7  ;;  %1537 = vmatprep.subr.bf16.mxu1 %v1590_v21 }
 0x12f   : > { %v1846_v23 = vsel %vm1709_vm6, %v689_v13, 0  ;;  %v671_v26 = vor.u32 %v669_v22, %v668_v15  ;;  %v788_v10 = vrot.slane %v1834_v0, 1  ;;  %v787_v33 = vrot.slane %v1810_v37, 1 }
 0x130   : > { %816 = vrot.lane.b32.xlu0 %v1828_v63, %s1611_s28  ;;  %814 = vrot.lane.b32.xlu1 %v1834_v0, %s1611_s28  ;;  %v690_v25 = vsel %vm1703_vm3, 0, %v657_v14  ;;  %v664_v27 = vor.u32 %v662_v24, %v661_v19  ;;  %v789_v35 = vrot.slane %v1828_v63, 1  ;;  %v790_v36 = vrot.slane %v1846_v23, 1  ;;  %v1952_v19 = vpop.permute.xlu0 %880 }
 0x131   : > { %v1856_v28 = vsel %vm1709_vm6, %v690_v25, 0  ;;  %v692_v29 = vsel %vm1703_vm3, 0, %v671_v26  ;;  %v729_v43 = vshll.u32 %v1834_v0, 16  ;;  %v715_v45 = vshll.u32 %v1818_v57, 16  ;;  %1538 = vmatpush3.bf16.msra.mxu1 %v1590_v21 }
 0x132   : > { %v691_v30 = vsel %vm1703_vm3, 0, %v664_v27  ;;  %v1868_v31 = vsel %vm1709_vm6, %v692_v29, 0  ;;  %v791_v39 = vrot.slane %v1856_v28, 1  ;;  %v722_v50 = vshll.u32 %v1810_v37, 16  ;;  %1539 = vmatprep.subr.bf16.mxu1 %v1591_v56 }
 0x133   : > { %v1874_v32 = vsel %vm1709_vm6, %v691_v30, 0  ;;  %v849_v41 = vrot.slane %v1868_v31, 1  ;;  %v731_v40 = vrot.slane %v729_v43, 1  ;;  %v717_v48 = vrot.slane %v715_v45, 1  ;;  %v794_v30 = vpop.permute.xlu1 %793 }
 0x134   : > { %868 = vrot.lane.b32.xlu0 %v1834_v0, %s1607_s20  ;;  %866 = vrot.lane.b32.xlu1 %v1810_v37, %s1607_s20  ;;  %v792_v38 = vrot.slane %v1874_v32, 1  ;;  %v727_v51 = vshrl.u32 %v1834_v0, 16  ;;  %v713_v49 = vshrl.u32 %v1818_v57, 16  ;;  %v724_v17 = vrot.slane %v722_v50, 1  ;;  %v762_v27 = vpop.permute.xlu0 %761 }
 0x135   : > { %v736_v53 = vshll.u32 %v1828_v63, 16  ;;  %v720_v20 = vshrl.u32 %v1810_v37, 16  ;;  %v734_v55 = vshrl.u32 %v1828_v63, 16  ;;  %v743_v58 = vshll.u32 %v1846_v23, 16  ;;  %1540 = vmatpush3.bf16.msra.mxu1 %v1591_v56 }
 0x136   : > { %v732_v47 = vor.u32 %v731_v40, %v727_v51  ;;  %v718_v18 = vor.u32 %v717_v48, %v713_v49  ;;  %v741_v44 = vshrl.u32 %v1846_v23, 16  ;;  %1563 = vmatprep.subr.msk.bf16.mxu1 %vm1125_vm8, %v1592_v60  ;;  %v1127_v61 = vsel %vm1125_vm8, %v1592_v60, 0 }
 0x137   : > { %v725_v54 = vor.u32 %v724_v17, %v720_v20  ;;  %v738_v34 = vrot.slane %v736_v53, 1  ;;  %v745_v59 = vrot.slane %v743_v58, 1  ;;  %v757_v1 = vshll.u32 %v1874_v32, 16 }
 0x138   : > { %872 = vrot.lane.b32.xlu0 %v1846_v23, %s1607_s20  ;;  %870 = vrot.lane.b32.xlu1 %v1828_v63, %s1607_s20  ;;  %v750_v7 = vshll.u32 %v1856_v28, 16  ;;  %v755_v9 = vshrl.u32 %v1874_v32, 16  ;;  %v829_v14 = vshll.u32 %v1868_v31, 16  ;;  %v748_v15 = vshrl.u32 %v1856_v28, 16  ;;  %v1961_v29 = vpop.permute.xlu0 %896 }
 0x139   : > { %v739_v42 = vor.u32 %v738_v34, %v734_v55  ;;  %1542 = vmatpush3.bf16.msra.mxu1 %v1127_v61  ;;  %v746_v62 = vor.u32 %v745_v59, %v741_v44  ;;  %v759_v6 = vrot.slane %v757_v1, 1  ;;  %v827_v25 = vshrl.u32 %v1868_v31, 16 }
 0x13a   : > { %v752_v13 = vrot.slane %v750_v7, 1  ;;  %v831_v24 = vrot.slane %v829_v14, 1 }
 0x13b   : > { %v760_v12 = vor.u32 %v759_v6, %v755_v9 }
 0x13c   : > { %820 = vrot.lane.b32.xlu0 %v1856_v28, %s1611_s28  ;;  %818 = vrot.lane.b32.xlu1 %v1846_v23, %s1611_s28  ;;  %v753_v22 = vor.u32 %v752_v13, %v748_v15  ;;  %v832_v26 = vor.u32 %v831_v24, %v827_v25 }
 0x140   : > { %824 = vrot.lane.b32.xlu0 %v1868_v31, %s1611_s28  ;;  %822 = vrot.lane.b32.xlu1 %v1874_v32, %s1611_s28 }
 0x144   : > { %876 = vrot.lane.b32.xlu0 %v1874_v32, %s1607_s20  ;;  %874 = vrot.lane.b32.xlu1 %v1856_v28, %s1607_s20 }
 0x148   : > { %795 = vrot.lane.b32.xlu0 %v786_v8, %s1609_s22  ;;  %878 = vrot.lane.b32.xlu1 %v1868_v31, %s1607_s20 }
 0x14c   : > { %799 = vrot.lane.b32.xlu0 %v788_v10, %s1609_s22  ;;  %797 = vrot.lane.b32.xlu1 %v787_v33, %s1609_s22 }
 0x150   : > { %852 = vrot.lane.b32.xlu0 %v787_v33, %s1612_s29  ;;  %850 = vrot.lane.b32.xlu1 %v786_v8, %s1612_s29  ;;  %v916_v8 = vsel %vm914_vm9, %v1715_v11, %v762_v27 }
 0x154   : > { %856 = vrot.lane.b32.xlu0 %v789_v35, %s1612_s29  ;;  %854 = vrot.lane.b32.xlu1 %v788_v10, %s1612_s29 }
 0x158   : > { %900 = vrot.lane.b32.xlu0 %v788_v10, %s1613_s11  ;;  %898 = vrot.lane.b32.xlu1 %v787_v33, %s1613_s11  ;;  %v932_v33 = vsel %vm370_vm0, %v916_v8, %v794_v30 }
 0x15c   : > { %904 = vrot.lane.b32.xlu0 %v790_v36, %s1613_s11  ;;  %902 = vrot.lane.b32.xlu1 %v789_v35, %s1613_s11 }
 0x160   : > { %803 = vrot.lane.b32.xlu0 %v790_v36, %s1609_s22  ;;  %801 = vrot.lane.b32.xlu1 %v789_v35, %s1609_s22 }
 0x164   : > { %807 = vrot.lane.b32.xlu0 %v792_v38, %s1609_s22  ;;  %805 = vrot.lane.b32.xlu1 %v791_v39, %s1609_s22 }
 0x168   : > { %860 = vrot.lane.b32.xlu0 %v791_v39, %s1612_s29  ;;  %858 = vrot.lane.b32.xlu1 %v790_v36, %s1612_s29 }
 0x16c   : > { %864 = vrot.lane.b32.xlu0 %v849_v41, %s1612_s29  ;;  %862 = vrot.lane.b32.xlu1 %v792_v38, %s1612_s29 }
 0x170   : > { %908 = vrot.lane.b32.xlu0 %v792_v38, %s1613_s11  ;;  %906 = vrot.lane.b32.xlu1 %v791_v39, %s1613_s11 }
 0x174   : > { %767 = vrot.lane.b32.xlu0 %v732_v47, %s1608_s21  ;;  %763 = vrot.lane.b32.xlu1 %v718_v18, %s1608_s21 }
 0x178   : > { %835 = vrot.lane.b32.xlu0 %v725_v54, %s1614_s19  ;;  %765 = vrot.lane.b32.xlu1 %v725_v54, %s1608_s21 }
 0x17c   : > { %839 = vrot.lane.b32.xlu0 %v739_v42, %s1614_s19  ;;  %833 = vrot.lane.b32.xlu1 %v718_v18, %s1614_s19 }
 0x180   : > { %884 = vrot.lane.b32.xlu0 %v732_v47, %s1610_s23  ;;  %837 = vrot.lane.b32.xlu1 %v732_v47, %s1614_s19 }
 0x184   : > { %888 = vrot.lane.b32.xlu0 %v746_v62, %s1610_s23  ;;  %882 = vrot.lane.b32.xlu1 %v725_v54, %s1610_s23 }
 0x188   : > { %771 = vrot.lane.b32.xlu0 %v746_v62, %s1608_s21  ;;  %886 = vrot.lane.b32.xlu1 %v739_v42, %s1610_s23 }
 0x18c   : > { %775 = vrot.lane.b32.xlu0 %v760_v12, %s1608_s21  ;;  %769 = vrot.lane.b32.xlu1 %v739_v42, %s1608_s21 }
 0x190   : > { %843 = vrot.lane.b32.xlu0 %v753_v22, %s1614_s19  ;;  %773 = vrot.lane.b32.xlu1 %v753_v22, %s1608_s21 }
 0x194   : > { %847 = vrot.lane.b32.xlu0 %v832_v26, %s1614_s19  ;;  %841 = vrot.lane.b32.xlu1 %v746_v62, %s1614_s19 }
 0x198   : > { %892 = vrot.lane.b32.xlu0 %v760_v12, %s1610_s23  ;;  %845 = vrot.lane.b32.xlu1 %v760_v12, %s1614_s19 }
 0x19c   : > { %912 = vrot.lane.b32.xlu0 %v785_v16, %s1613_s11  ;;  %890 = vrot.lane.b32.xlu1 %v753_v22, %s1610_s23 }
 0x19e   : > { %v813_v10 = vpop.permute.xlu0 %812  ;;  %v811_v35 = vpop.permute.xlu1 %810 }
 0x19f   : > { %v949_v36 = vsel %vm947_vm10, %v932_v33, %v811_v35 }
 0x1a0   : > { %1208 = vrot.lane.b32.xlu0 %v1689_v3, %s1608_s21  ;;  %894 = vrot.lane.b32.xlu1 %v832_v26, %s1610_s23 }
 0x1a2   : > { %v817_v38 = vpop.permute.xlu0 %816  ;;  %v1975_v39 = vpop.permute.xlu1 %814 }
 0x1a4   : > { %1212 = vrot.lane.b32.xlu0 %v1699_v5, %s1608_s21  ;;  %910 = vrot.lane.b32.xlu1 %v849_v41, %s1613_s11 }
 0x1a6   : > { %v869_v11 = vpop.permute.xlu0 %868  ;;  %v1982_v16 = vpop.permute.xlu1 %866 }
 0x1a8   : > { %1206 = vrot.lane.b32.xlu1 %v1687_v2, %s1608_s21 }
 0x1aa   : > { %v1986_v43 = vpop.permute.xlu0 %872  ;;  %v1988_v3 = vpop.permute.xlu1 %870 }
 0x1ac   : > { %1210 = vrot.lane.b32.xlu1 %v1693_v4, %s1608_s21 }
 0x1ae   : > { %v1992_v45 = vpop.permute.xlu0 %820  ;;  %v1994_v5 = vpop.permute.xlu1 %818 }
 0x1b2   : > { %v1996_v46 = vpop.permute.xlu0 %824  ;;  %v1998_v31 = vpop.permute.xlu1 %822 }
 0x1b6   : > { %v2000_v41 = vpop.permute.xlu0 %876  ;;  %v2002_v40 = vpop.permute.xlu1 %874 }
 0x1ba   : > { %v796_v2 = vpop.permute.xlu0 %795  ;;  %v2004_v50 = vpop.permute.xlu1 %878 }
 0x1be   : > { %v800_v48 = vpop.permute.xlu0 %799  ;;  %v798_v51 = vpop.permute.xlu1 %797 }
 0x1c2   : > { %v853_v49 = vpop.permute.xlu0 %852  ;;  %v851_v52 = vpop.permute.xlu1 %850 }
 0x1c6   : > { %v857_v4 = vpop.permute.xlu0 %856  ;;  %v855_v47 = vpop.permute.xlu1 %854 }
 0x1ca   : > { %v901_v17 = vpop.permute.xlu0 %900  ;;  %v899_v53 = vpop.permute.xlu1 %898 }
 0x1ce   : > { %v905_v18 = vpop.permute.xlu0 %904  ;;  %v903_v20 = vpop.permute.xlu1 %902 }
 0x1d2   : > { %v2006_v21 = vpop.permute.xlu0 %803  ;;  %v2008_v54 = vpop.permute.xlu1 %801 }
 0x1d6   : > { %v2010_v34 = vpop.permute.xlu0 %807  ;;  %v2012_v55 = vpop.permute.xlu1 %805 }
 0x1da   : > { %v2014_v56 = vpop.permute.xlu0 %860  ;;  %v2016_v42 = vpop.permute.xlu1 %858 }
 0x1de   : > { %v2018_v58 = vpop.permute.xlu0 %864  ;;  %v2020_v59 = vpop.permute.xlu1 %862 }
 0x1e2   : > { %v2022_v60 = vpop.permute.xlu0 %908  ;;  %v2024_v44 = vpop.permute.xlu1 %906 }
 0x1e6   : > { %v768_v61 = vpop.permute.xlu0 %767  ;;  %v764_v62 = vpop.permute.xlu1 %763 }
 0x1e7   : > { %v918_v1 = vsel %vm914_vm9, %v1818_v57, %v764_v62  ;;  %v922_v12 = vsel %vm914_vm9, %v1834_v0, %v768_v61 }
 0x1e8   : > { %v934_v6 = vsel %vm370_vm0, %v918_v1, %v796_v2  ;;  %v938_v22 = vsel %vm370_vm0, %v922_v12, %v800_v48 }
 0x1e9   : > { %v951_v13 = vsel %vm947_vm10, %v934_v6, %v813_v10  ;;  %v955_v0 = vsel %vm947_vm10, %v938_v22, %v817_v38 }
 0x1ea   : > { %v836_v7 = vpop.permute.xlu0 %835  ;;  %v766_v9 = vpop.permute.xlu1 %765 }
 0x1eb   : > { %v920_v14 = vsel %vm914_vm9, %v1810_v37, %v766_v9  ;;  %v968_v24 = vsel %vm964_vm11, %v951_v13, %v836_v7 }
 0x1ec   : > { %v936_v25 = vsel %vm370_vm0, %v920_v14, %v798_v51  ;;  %v985_v27 = vsel %vm981_vm12, %v968_v24, %v853_v49 }
 0x1ed   : > { %v953_v33 = vsel %vm947_vm10, %v936_v25, %v1975_v39  ;;  %v1002_v35 = vsel %vm998_vm13, %v985_v27, %v869_v11 }
 0x1ee   : > { %v840_v15 = vpop.permute.xlu0 %839  ;;  %v834_v57 = vpop.permute.xlu1 %833 }
 0x1ef   : > { %v966_v26 = vsel %vm964_vm11, %v949_v36, %v834_v57  ;;  %v972_v8 = vsel %vm964_vm11, %v955_v0, %v840_v15 }
 0x1f0   : > { %v983_v10 = vsel %vm981_vm12, %v966_v26, %v851_v52  ;;  %v989_v36 = vsel %vm981_vm12, %v972_v8, %v857_v4 }
 0x1f1   : > { %v1000_v51 = vsel %vm998_vm13, %v983_v10, %v1982_v16  ;;  %v1006_v39 = vsel %vm998_vm13, %v989_v36, %v1986_v43 }
 0x1f2   : > { %v885_v30 = vpop.permute.xlu0 %884  ;;  %v838_v37 = vpop.permute.xlu1 %837 }
 0x1f3   : > { %v970_v2 = vsel %vm964_vm11, %v953_v33, %v838_v37  ;;  %v1019_v48 = vsel %vm1015_vm14, %v1002_v35, %v885_v30 }
 0x1f4   : > { %v987_v61 = vsel %vm981_vm12, %v970_v2, %v855_v47  ;;  %v1036_v62 = vsel %vm1032_vm15, %v1019_v48, %v901_v17 }
 0x1f5   : > { %v1004_v16 = vsel %vm998_vm13, %v987_v61, %v1988_v3 }
 0x1f6   : > { %v889_v38 = vpop.permute.xlu0 %888  ;;  %v883_v49 = vpop.permute.xlu1 %882 }
 0x1f7   : > { %v1017_v52 = vsel %vm1015_vm14, %v1000_v51, %v883_v49  ;;  %v1023_v4 = vsel %vm1015_vm14, %v1006_v39, %v889_v38  ;;  %v1454_v49 = vld [vmem:[%s2175_s6] ss:$0 sm:$0xff] }
 0x1f8   : > { %v1034_v11 = vsel %vm1032_vm15, %v1017_v52, %v899_v53  ;;  %v1040_v9 = vsel %vm1032_vm15, %v1023_v4, %v905_v18 }
 0x1f9   : > { %v1455_v6 = vcombine.low %v1034_v11, %v1036_v62 }
 0x1fa   : > { %v772_v1 = vpop.permute.xlu0 %771  ;;  %v887_v7 = vpop.permute.xlu1 %886 }
 0x1fb   : > { %v1021_v47 = vsel %vm1015_vm14, %v1004_v16, %v887_v7  ;;  %1543 = vmatprep.mubr.msk.bf16.mxu1 %vm1112_vm1, %v1455_v6  ;;  %v926_v13 = vsel %vm914_vm9, %v1846_v23, %v772_v1 }
 0x1fc   : > { %v1038_v43 = vsel %vm1032_vm15, %v1021_v47, %v903_v20  ;;  %v942_v15 = vsel %vm370_vm0, %v926_v13, %v2006_v21 }
 0x1fd   : > { %v1456_v53 = vcombine.low %v1038_v43, %v1040_v9  ;;  %v959_v20 = vsel %vm947_vm10, %v942_v15, %v1992_v45 }
 0x1fe   : > { %v776_v12 = vpop.permute.xlu0 %775  ;;  %v770_v17 = vpop.permute.xlu1 %769 }
 0x1ff   : > { %1544 = vmatmul.mubr.msk.bf16.vlgmr.msra.gmra.mrb[0].mxu1 %vm1112_vm1, %v1456_v53  ;;  %v924_v3 = vsel %vm914_vm9, %v1828_v63, %v770_v17  ;;  %v930_v23 = vsel %vm914_vm9, %v1874_v32, %v776_v12 }
 0x200   : > { %v940_v18 = vsel %vm370_vm0, %v924_v3, %v2008_v54  ;;  %v946_v54 = vsel %vm370_vm0, %v930_v23, %v2010_v34 }
 0x201   : > { %v957_v63 = vsel %vm947_vm10, %v940_v18, %v1994_v5  ;;  %v963_v5 = vsel %vm947_vm10, %v946_v54, %v1996_v46 }
 0x202   : > { %v844_v14 = vpop.permute.xlu0 %843  ;;  %v774_v22 = vpop.permute.xlu1 %773 }
 0x203   : > { %v976_v57 = vsel %vm964_vm11, %v959_v20, %v844_v14  ;;  %v928_v21 = vsel %vm914_vm9, %v1856_v28, %v774_v22 }
 0x204   : > { %v993_v45 = vsel %vm981_vm12, %v976_v57, %v2014_v56  ;;  %v944_v32 = vsel %vm370_vm0, %v928_v21, %v2012_v55  ;;  %vm1361_vm0 = vcmask 257024  }
 0x205   : > { %v1010_v28 = vsel %vm998_vm13, %v993_v45, %v2000_v41  ;;  %v961_v56 = vsel %vm947_vm10, %v944_v32, %v1998_v31 }
 0x206   : > { %v848_v24 = vpop.permute.xlu0 %847  ;;  %v842_v25 = vpop.permute.xlu1 %841 }
 0x207   : > { %v974_v26 = vsel %vm964_vm11, %v957_v63, %v842_v25  ;;  %v980_v8 = vsel %vm964_vm11, %v963_v5, %v848_v24  ;;  %v1468_v5 = vld [vmem:[%s2177_s8] ss:$0 sm:$0xff] }
 0x208   : > { %v991_v30 = vsel %vm981_vm12, %v974_v26, %v2016_v42  ;;  %v997_v46 = vsel %vm981_vm12, %v980_v8, %v2018_v58 }
 0x209   : > { %v1008_v37 = vsel %vm998_vm13, %v991_v30, %v2002_v40  ;;  %v1014_v40 = vsel %vm998_vm13, %v997_v46, %v1952_v19  ;;  %v1593_v19 = vld [vmem:[%s2176_s7] sm:$0xff]  }
 0x20a   : > { %v893_v27 = vpop.permute.xlu0 %892  ;;  %v846_v0 = vpop.permute.xlu1 %845  ;;  %1551 = vmatprep.subr.bf16.mxu0 %v1593_v19 }
 0x20b   : > { %v1027_v34 = vsel %vm1015_vm14, %v1010_v28, %v893_v27  ;;  %v978_v10 = vsel %vm964_vm11, %v961_v56, %v846_v0  ;;  %1552 = vmatpush3.bf16.msra.mxu0 %v1593_v19 }
 0x20c   : > { %v1044_v41 = vsel %vm1032_vm15, %v1027_v34, %v2022_v60  ;;  %v995_v31 = vsel %vm981_vm12, %v978_v10, %v2020_v59  ;;  %v1031_v60 = vsel %vm1015_vm14, %v1014_v40, %v1961_v29 }
 0x20d   : > { %v1012_v58 = vsel %vm998_vm13, %v995_v31, %v2004_v50  ;;  %v1594_v50 = vld [vmem:[%s2176_s7 + $0x8] ss:$0 sps:$4 sm:$0xff]  }
 0x20e   : > { %v891_v55 = vpop.permute.xlu1 %890  ;;  %v913_v36 = vpop.permute.xlu0 %912  ;;  %1564 = vmatprep.subr.msk.bf16.mxu0 %vm1125_vm8, %v1594_v50  ;;  %v1254_v29 = vsel %vm1125_vm8, %v1594_v50, 0 }
 0x20f   : > { %v1025_v42 = vsel %vm1015_vm14, %v1008_v37, %v891_v55  ;;  %v1048_v38 = vsel %vm1032_vm15, %v1031_v60, %v913_v36  ;;  %1554 = vmatpush3.bf16.msra.mxu0 %v1254_v29 }
 0x210   : > { %v1042_v33 = vsel %vm1032_vm15, %v1025_v42, %v2024_v44 }
 0x211   : > { %v1457_v35 = vcombine.low %v1042_v33, %v1044_v41 }
 0x212   : > { %v895_v2 = vpop.permute.xlu1 %894  ;;  %v1209_v17 = vpop.permute.xlu0 %1208 }
 0x213   : > { %1547 = vmatprep.mubr.msk.bf16.mxu1 %vm1112_vm1, %v1457_v35  ;;  %v1029_v48 = vsel %vm1015_vm14, %v1012_v58, %v895_v2 }
 0x216   : > { %v911_v44 = vpop.permute.xlu1 %910  ;;  %v1213_v0 = vpop.permute.xlu0 %1212 }
 0x217   : > { %v1046_v59 = vsel %vm1032_vm15, %v1029_v48, %v911_v44 }
 0x218   : > { %v1458_v51 = vcombine.low %v1046_v59, %v1048_v38 }
 0x21a   : > { %1548 = vmatmul.mubr.msk.bf16.gmra.mrb[4].mxu1 %vm1112_vm1, %v1458_v51  ;;  %v1207_v53 = vpop.permute.xlu1 %1206 }
 0x21e   : > { %v1211_v45 = vpop.permute.xlu1 %1210 }
 0x2d2   : > { %v1545_v61 = vpop.f32.mrb[0].mxu1 }
 0x2d3   : > { %v1172_v52 = vadd.f32 %v1545_v61, %v1454_v49  ;;  %v1163_v39 = vpop.f32.mrb[1].mxu1 }
 0x2d4   : > { %v1164_v11 = vadd.f32 %v1454_v49, %v1163_v39  ;;  %v1546_v62 = vpop.f32.mrb[2].mxu1 }
 0x2d5   : > { %v1175_v4 = vadd.f32 %v1546_v62, %v1454_v49  ;;  %v1166_v1 = vpop.f32.mrb[3].mxu1  ;;  %v1196_v16 = vmax.f32 %v1172_v52, 0.0 }
 0x2d6   : > { %v1167_v6 = vadd.f32 %v1454_v49, %v1166_v1  ;;  %v1194_v47 = vmax.f32 %v1164_v11, 0.0 }
 0x2d7   : > { %v1197_v7 = vmax.f32 %v1175_v4, 0.0 }
 0x2d8   : > { %v1195_v9 = vmax.f32 %v1167_v6, 0.0 }
 0x2d9   : > { %v1203_v43 = vpack.c.bf16 %v1197_v7, %v1196_v16 }
 0x2da   : > { %v1202_v12 = vpack.c.bf16 %v1195_v9, %v1194_v47 }
 0x2db   : > { %v1219_v3 = vsel %vm914_vm9, %v1203_v43, %v1209_v17 }
 0x2dc   : > { %v1216_v13 = vsel %vm914_vm9, %v1202_v12, %v1207_v53 }
 0x2dd   : > { %1555 = vmatprep.mubr.msk.bf16.mxu0 %vm947_vm10, %v1216_v13 }
 0x2de   : > { %1556 = vmatmul.mubr.msk.bf16.vlgmr.msra.gmra.mrb[8].mxu0 %vm947_vm10, %v1219_v3 }
 0x2ed   : > { %v1549_v14 = vpop.f32.mrb[4].mxu1 }
 0x2ee   : > { %v1188_v15 = vadd.f32 %v1549_v14, %v1454_v49  ;;  %v1179_v22 = vpop.f32.mrb[5].mxu1 }
 0x2ef   : > { %v1180_v18 = vadd.f32 %v1454_v49, %v1179_v22  ;;  %v1550_v20 = vpop.f32.mrb[6].mxu1 }
 0x2f0   : > { %v1191_v24 = vadd.f32 %v1550_v20, %v1454_v49  ;;  %v1182_v23 = vpop.f32.mrb[7].mxu1  ;;  %v1200_v25 = vmax.f32 %v1188_v15, 0.0 }
 0x2f1   : > { %v1183_v57 = vadd.f32 %v1454_v49, %v1182_v23  ;;  %v1198_v21 = vmax.f32 %v1180_v18, 0.0 }
 0x2f2   : > { %v1201_v63 = vmax.f32 %v1191_v24, 0.0 }
 0x2f3   : > { %v1199_v26 = vmax.f32 %v1183_v57, 0.0 }
 0x2f4   : > { %v1205_v54 = vpack.c.bf16 %v1201_v63, %v1200_v25 }
 0x2f5   : > { %v1204_v27 = vpack.c.bf16 %v1199_v26, %v1198_v21 }
 0x2f6   : > { %v1225_v30 = vsel %vm914_vm9, %v1205_v54, %v1213_v0 }
 0x2f7   : > { %v1222_v32 = vsel %vm914_vm9, %v1204_v27, %v1211_v45 }
 0x2f8   : > { %1559 = vmatprep.mubr.msk.bf16.mxu0 %vm947_vm10, %v1222_v32 }
 0x2f9   : > { %1560 = vmatmul.mubr.msk.bf16.gmra.mrb[12].mxu0 %vm947_vm10, %v1225_v30 }
 0x3b1   : > { %v1557_v28 = vpop.f32.mrb[8].mxu0 }
 0x3b2   : > { %v1299_v8 = vadd.f32 %v1557_v28, %v1468_v5  ;;  %v1290_v34 = vpop.f32.mrb[9].mxu0 }
 0x3b3   : > { %v1291_v56 = vadd.f32 %v1468_v5, %v1290_v34  ;;  %v1558_v37 = vpop.f32.mrb[10].mxu0 }
 0x3b4   : > { %v1323_v55 = vmax.f32 %v1299_v8, 0.0  ;;  %v1302_v10 = vadd.f32 %v1558_v37, %v1468_v5  ;;  %v1293_v42 = vpop.f32.mrb[11].mxu0 }
 0x3b5   : > { %v1321_v46 = vmax.f32 %v1291_v56, 0.0  ;;  %v1294_v41 = vadd.f32 %v1468_v5, %v1293_v42 }
 0x3b6   : > { %v1497_v33 = vpack.c.bf16 %v1323_v55, %v1323_v55  ;;  %v1324_v35 = vmax.f32 %v1302_v10, 0.0 }
 0x3b7   : > { %v1495_v31 = vpack.c.bf16 %v1321_v46, %v1321_v46  ;;  %v1322_v2 = vmax.f32 %v1294_v41, 0.0 }
 0x3b8   : > { %1364 = vst.msk [vmem:[%s2148_s15 + $0x8] sm:$0xf] %vm1361_vm0, %v1497_v33  ;;  %v1498_v40 = vpack.c.bf16 %v1324_v35, %v1324_v35 }
 0x3b9   : > { %1362 = vst.msk [vmem:[%s2148_s15] sm:$0xf] %vm1361_vm0, %v1495_v31  ;;  %v1496_v36 = vpack.c.bf16 %v1322_v2, %v1322_v2 }
 0x3ba   : > { %1365 = vst.msk [vmem:[%s2148_s15 + $0xc] sm:$0xf] %vm1361_vm0, %v1498_v40 }
 0x3bb   : > { %1363 = vst.msk [vmem:[%s2148_s15 + $0x4] sm:$0xf] %vm1361_vm0, %v1496_v36 }
 0x3cc   : > { %v1561_v58 = vpop.f32.mrb[12].mxu0 }
 0x3cd   : > { %v1315_v60 = vadd.f32 %v1561_v58, %v1468_v5  ;;  %v1306_v48 = vpop.f32.mrb[13].mxu0 }
 0x3ce   : > { %v1307_v44 = vadd.f32 %v1468_v5, %v1306_v48  ;;  %v1562_v38 = vpop.f32.mrb[14].mxu0 }
 0x3cf   : > { %v1327_v59 = vmax.f32 %v1315_v60, 0.0  ;;  %v1318_v51 = vadd.f32 %v1562_v38, %v1468_v5  ;;  %v1309_v19 = vpop.f32.mrb[15].mxu0 }
 0x3d0   : > { %v1325_v50 = vmax.f32 %v1307_v44, 0.0  ;;  %v1310_v29 = vadd.f32 %v1468_v5, %v1309_v19 }
 0x3d1   : > { %v1501_v49 = vpack.c.bf16 %v1327_v59, %v1327_v59  ;;  %v1328_v61 = vmax.f32 %v1318_v51, 0.0 }
 0x3d2   : > { %v1499_v52 = vpack.c.bf16 %v1325_v50, %v1325_v50  ;;  %v1326_v39 = vmax.f32 %v1310_v29, 0.0 }
 0x3d3   : > { %1368 = vst.msk [vmem:[%s2148_s15 + $0x18] sm:$0xf] %vm1361_vm0, %v1501_v49  ;;  %v1502_v11 = vpack.c.bf16 %v1328_v61, %v1328_v61 }
 0x3d4   : > { %1366 = vst.msk [vmem:[%s2148_s15 + $0x10] sm:$0xf] %vm1361_vm0, %v1499_v52  ;;  %v1500_v62 = vpack.c.bf16 %v1326_v39, %v1326_v39 }
 0x3d5   : > { %1369 = vst.msk [vmem:[%s2148_s15 + $0x1c] sm:$0xf] %vm1361_vm0, %v1502_v11 }
 0x3d6   : > { %1367 = vst.msk [vmem:[%s2148_s15 + $0x14] sm:$0xf] %vm1361_vm0, %v1500_v62 }
 0x3d7 PF: > { %s19_s30 = sadd.s32 1, %s1603_s30  }
 0x3d8   : > { %p16_p4 = scmp.ge.s32.totalorder %s19_s30, 4  }
 0x3da   :  { %18 = sbr.rel (!%p16_p4) target bundleno = 1 (0x1), region = 86 }

</bundles_post_ra>
